<compile_context>
chip_gen: v6e
topology: v6e:2x2x1
jax: 0.10.0
libtpu: 0.0.40
codegen_flags: <defaults>
</compile_context>

<pallas_src>
import functools

import jax
import jax.numpy as jnp
from jax.experimental import pallas as pl
from jax.experimental.pallas import tpu as pltpu

EPS = 1e-6


def _sublayer_kernel(x_ref, gamma_ref, beta_ref, w_ref, b_ref, *rest, p, keep_threshold):
    # x_ref: (TM, D) tile; gamma/beta/b: (1, D); w: (D, D); optional bits: (TM, D) int32
    if p > 0.0:
        bits_ref, o_ref = rest
    else:
        (o_ref,) = rest

    x = x_ref[...].astype(jnp.float32)
    d = x.shape[-1]

    # ---- LayerNorm: a_2 * (x - mean) / (std_unbiased + eps) + b_2 ----
    mean = jnp.mean(x, axis=-1, keepdims=True)
    diff = x - mean
    std = jnp.sqrt(jnp.sum(diff * diff, axis=-1, keepdims=True) * (1.0 / (d - 1)))
    inv = 1.0 / (std + EPS)                      # (TM, 1): only a per-row divide
    normed = gamma_ref[...] * (diff * inv) + beta_ref[...]

    # ---- sublayer: dense D -> D on the MXU (bf16 operands, f32 accumulate) ----
    y = jnp.dot(normed.astype(w_ref.dtype), w_ref[...],
                preferred_element_type=jnp.float32)
    y = y + b_ref[...].astype(jnp.float32)       # bias applied before dropout (fidelity)

    # ---- dropout (inverted; integer threshold on externally supplied bits) ----
    if p > 0.0:
        keep = bits_ref[...] >= jnp.int32(keep_threshold)
        y = jnp.where(keep, y * jnp.float32(1.0 / (1.0 - p)), jnp.float32(0.0))

    # ---- residual ----
    o_ref[...] = (x + y).astype(o_ref.dtype)


def self_att_sublayer(x, gamma, beta, w, b, *, p=0.0, rng_key=None, tm=256,
                      matmul_dtype=jnp.bfloat16):
    """x: (B, S, D).  Returns x + dropout(linear(LayerNorm(x))).

    LayerNorm matches the Annotated-Transformer variant used with this module:
    unbiased std (ddof=1) and eps added to std (eps=1e-6).
    """
    B, S, D = x.shape
    rows = B * S
    xf = x.reshape(rows, D)

    # Pad rows to a multiple of the row tile; padded rows are sliced off at the end.
    n_tiles = pl.cdiv(rows, tm)
    rows_p = n_tiles * tm
    if rows_p != rows:
        xf = jnp.pad(xf, ((0, rows_p - rows), (0, 0)))

    w_mx = w.astype(matmul_dtype)   # bf16 by default: native MXU rate, half the weight bytes

    in_specs = [
        pl.BlockSpec((tm, D), lambda i: (i, 0)),   # x tile
        pl.BlockSpec((1, D), lambda i: (0, 0)),    # gamma (a_2)
        pl.BlockSpec((1, D), lambda i: (0, 0)),    # beta  (b_2)
        pl.BlockSpec((D, D), lambda i: (0, 0)),    # sublayer weight
        pl.BlockSpec((1, D), lambda i: (0, 0)),    # sublayer bias
    ]
    args = [xf, gamma, beta, w_mx, b]

    keep_threshold = 0
    if p > 0.0:
        if rng_key is None:
            rng_key = jax.random.PRNGKey(0)
        # Uniform bits in [0, 2^31) as int32 (avoids unsigned compares in-kernel).
        bits = (jax.random.bits(rng_key, (rows_p, D), dtype=jnp.uint32)
                >> jnp.uint32(1)).astype(jnp.int32)
        in_specs.append(pl.BlockSpec((tm, D), lambda i: (i, 0)))
        args.append(bits)
        keep_threshold = min(int(round(float(p) * 2.0 ** 31)), 2 ** 31 - 1)

    kernel = functools.partial(_sublayer_kernel, p=float(p),
                               keep_threshold=keep_threshold)
    out = pl.pallas_call(
        kernel,
        out_shape=jax.ShapeDtypeStruct((rows_p, D), x.dtype),
        grid_spec=pltpu.PrefetchScalarGridSpec(
            num_scalar_prefetch=0,
            grid=(n_tiles,),
            in_specs=in_specs,
            out_specs=pl.BlockSpec((tm, D), lambda i: (i, 0)),
        ),
        compiler_params=pltpu.CompilerParams(dimension_semantics=("parallel",)),
    )(*args)
    return out[:rows].reshape(B, S, D)


def self_att_decoder_layer(x, memory, params, *, p=0.0, rng_key=None, tm=256):
    """Mirrors SelfAttDecoderLayer.forward: three chained pre-norm residual sublayers.

    The injected self_attn / src_attn / feed_forward nn.Modules are not defined in the
    spec; each is stood in by a deterministic dense D->D projection inside the kernel.
    """
    # TODO(synk): real multi-head self/src attention (and the returned attention maps
    # self_attn.attn / src_attn.attn) require the external attention-module definitions;
    # the src-attn stand-in therefore does not consume `memory`.
    del memory
    if rng_key is None:
        rng_key = jax.random.PRNGKey(0)
    keys = jax.random.split(rng_key, 3)
    for (gamma, beta, w, b), k in zip(params, keys):
        x = self_att_sublayer(x, gamma, beta, w, b, p=p, rng_key=k, tm=tm)
    return x


def _reference(x, gamma, beta, w, b):
    """Pure-JAX reference for the deterministic (p=0) path."""
    d = x.shape[-1]
    mean = jnp.mean(x, axis=-1, keepdims=True)
    diff = x - mean
    std = jnp.sqrt(jnp.sum(diff * diff, axis=-1, keepdims=True) / (d - 1))
    normed = gamma[0] * diff / (std + EPS) + beta[0]
    return x + jnp.dot(normed, w, precision="highest") + b[0]


if __name__ == "__main__":
    key = jax.random.PRNGKey(0)
    B, S, D = 2, 256, 128          # rows = 512 -> two (256, 128) row tiles
    kx, kw1, kw2, kw3, kdrop = jax.random.split(key, 5)

    x = jax.random.normal(kx, (B, S, D), dtype=jnp.float32)
    # LayerNorm params (PyTorch init: a_2 = ones, b_2 = zeros)
    gamma = jnp.ones((1, D), dtype=jnp.float32)
    beta = jnp.zeros((1, D), dtype=jnp.float32)
    # Deterministic stand-in sublayer: dense D -> D
    w = jax.random.normal(kw1, (D, D), dtype=jnp.float32) * 0.02
    b = jnp.zeros((1, D), dtype=jnp.float32)

    ref = _reference(x, gamma, beta, w, b)

    # 1) Deterministic path, f32 matmul: tight check vs reference.
    out_f32 = self_att_sublayer(x, gamma, beta, w, b, p=0.0, matmul_dtype=jnp.float32)
    assert jnp.allclose(out_f32, ref, atol=2e-3, rtol=2e-3), "f32 path mismatch"

    # 2) Deterministic path, bf16 matmul operands (perf default): looser tolerance.
    out_bf16 = self_att_sublayer(x, gamma, beta, w, b, p=0.0)
    assert jnp.allclose(out_bf16, ref, atol=2e-2, rtol=2e-2), "bf16 path mismatch"

    # 3) Training-mode forward with dropout=0.1 (external random bits, in-kernel threshold).
    out_train = self_att_sublayer(x, gamma, beta, w, b, p=0.1, rng_key=kdrop)
    jax.block_until_ready(out_train)
    assert out_train.shape == (B, S, D)
    assert bool(jnp.all(jnp.isfinite(out_train)))

    # 4) Full decoder-layer composition: three chained pre-norm residual sublayers.
    params = [
        (gamma, beta, w, b),
        (gamma, beta, jax.random.normal(kw2, (D, D), dtype=jnp.float32) * 0.02, b),
        (gamma, beta, jax.random.normal(kw3, (D, D), dtype=jnp.float32) * 0.02, b),
    ]
    memory = jax.random.normal(kx, (B, S, D), dtype=jnp.float32)
    out_dec = self_att_decoder_layer(x, memory, params, p=0.1, rng_key=kdrop)
    jax.block_until_ready(out_dec)
    assert out_dec.shape == (B, S, D)
    assert bool(jnp.all(jnp.isfinite(out_dec)))

    print("KERNEL_OK")
</pallas_src>

<mosaic_0001>
module attributes {stable_mosaic.version = 11 : i64} {
  func.func @_sublayer_kernel(%arg0: i32, %arg1: memref<256x128xf32, #tpu.memory_space<vmem>>, %arg2: memref<1x128xf32, #tpu.memory_space<vmem>>, %arg3: memref<1x128xf32, #tpu.memory_space<vmem>>, %arg4: memref<128x128xf32, #tpu.memory_space<vmem>>, %arg5: memref<1x128xf32, #tpu.memory_space<vmem>>, %arg6: memref<256x128xf32, #tpu.memory_space<vmem>>) attributes {dimension_semantics = [#tpu.dimension_semantics<parallel>], iteration_bounds = array<i64: 2>, scalar_prefetch = 0 : i64, scratch_operands = 0 : i64, tpu.core_type = #tpu.core_type<tc>, window_params = [{transform_indices = @transform_0, window_bounds = array<i64: 256, 128>}, {pipeline_mode = #tpu.pipeline_mode<synchronous>, transform_indices = @transform_1, window_bounds = array<i64: 1, 128>}, {pipeline_mode = #tpu.pipeline_mode<synchronous>, transform_indices = @transform_2, window_bounds = array<i64: 1, 128>}, {pipeline_mode = #tpu.pipeline_mode<synchronous>, transform_indices = @transform_3, window_bounds = array<i64: 128, 128>}, {pipeline_mode = #tpu.pipeline_mode<synchronous>, transform_indices = @transform_4, window_bounds = array<i64: 1, 128>}, {transform_indices = @transform_5, window_bounds = array<i64: 256, 128>}]} {
    %c0 = arith.constant 0 : index
    %c0_0 = arith.constant 0 : index
    %0 = vector.load %arg1[%c0, %c0_0] : memref<256x128xf32, #tpu.memory_space<vmem>>, vector<256x128xf32>
    %cst = arith.constant dense<0.000000e+00> : vector<256xf32>
    %1 = vector.multi_reduction <add>, %0, %cst [1] : vector<256x128xf32> to vector<256xf32>
    %2 = vector.shape_cast %1 : vector<256xf32> to vector<256x1xf32>
    %cst_1 = arith.constant 1.280000e+02 : f32
    %3 = vector.broadcast %cst_1 : f32 to vector<256x1xf32>
    %4 = arith.divf %2, %3 : vector<256x1xf32>
    %5 = vector.broadcast %4 : vector<256x1xf32> to vector<256x128xf32>
    %6 = arith.subf %0, %5 : vector<256x128xf32>
    %7 = arith.mulf %6, %6 : vector<256x128xf32>
    %cst_2 = arith.constant dense<0.000000e+00> : vector<256xf32>
    %8 = vector.multi_reduction <add>, %7, %cst_2 [1] : vector<256x128xf32> to vector<256xf32>
    %9 = vector.shape_cast %8 : vector<256xf32> to vector<256x1xf32>
    %cst_3 = arith.constant 0.00787401571 : f32
    %10 = vector.broadcast %cst_3 : f32 to vector<256x1xf32>
    %11 = arith.mulf %9, %10 : vector<256x1xf32>
    %12 = math.sqrt %11 : vector<256x1xf32>
    %cst_4 = arith.constant 9.99999997E-7 : f32
    %13 = vector.broadcast %cst_4 : f32 to vector<256x1xf32>
    %14 = arith.addf %12, %13 : vector<256x1xf32>
    %cst_5 = arith.constant 1.000000e+00 : f32
    %15 = vector.broadcast %cst_5 : f32 to vector<256x1xf32>
    %16 = arith.divf %15, %14 : vector<256x1xf32>
    %c0_6 = arith.constant 0 : index
    %c0_7 = arith.constant 0 : index
    %17 = vector.load %arg2[%c0_6, %c0_7] : memref<1x128xf32, #tpu.memory_space<vmem>>, vector<1x128xf32>
    %18 = vector.broadcast %16 : vector<256x1xf32> to vector<256x128xf32>
    %19 = arith.mulf %6, %18 : vector<256x128xf32>
    %20 = vector.broadcast %17 : vector<1x128xf32> to vector<256x128xf32>
    %21 = arith.mulf %20, %19 : vector<256x128xf32>
    %c0_8 = arith.constant 0 : index
    %c0_9 = arith.constant 0 : index
    %22 = vector.load %arg3[%c0_8, %c0_9] : memref<1x128xf32, #tpu.memory_space<vmem>>, vector<1x128xf32>
    %23 = vector.broadcast %22 : vector<1x128xf32> to vector<256x128xf32>
    %24 = arith.addf %21, %23 : vector<256x128xf32>
    %c0_10 = arith.constant 0 : index
    %c0_11 = arith.constant 0 : index
    %25 = vector.load %arg4[%c0_10, %c0_11] : memref<128x128xf32, #tpu.memory_space<vmem>>, vector<128x128xf32>
    %cst_12 = arith.constant dense<0.000000e+00> : vector<256x128xf32>
    %26 = tpu.matmul %24, %25, %cst_12 {dimension_numbers = #tpu.dot_dimension_numbers<[1], [0], [0], [1], [0, 0, 1, 1], [], []>} : vector<256x128xf32>, vector<128x128xf32>, vector<256x128xf32> -> vector<256x128xf32>
    %c0_13 = arith.constant 0 : index
    %c0_14 = arith.constant 0 : index
    %27 = vector.load %arg5[%c0_13, %c0_14] : memref<1x128xf32, #tpu.memory_space<vmem>>, vector<1x128xf32>
    %28 = vector.broadcast %27 : vector<1x128xf32> to vector<256x128xf32>
    %29 = arith.addf %26, %28 : vector<256x128xf32>
    %30 = arith.addf %0, %29 : vector<256x128xf32>
    %c0_15 = arith.constant 0 : index
    %c0_16 = arith.constant 0 : index
    %31 = vector.load %arg6[%c0_15, %c0_16] : memref<256x128xf32, #tpu.memory_space<vmem>>, vector<256x128xf32>
    tpu.vector_store %arg6[%c0_15, %c0_16], %30 {strides = array<i32>} : memref<256x128xf32, #tpu.memory_space<vmem>>, vector<256x128xf32>,
    return
  }
  func.func @transform_0(%arg0: i32) -> (i32, i32) {
    %c0_i32 = arith.constant 0 : i32
    %c0_i32_0 = arith.constant 0 : i32
    return %arg0, %c0_i32 : i32, i32
  }
  func.func @transform_1(%arg0: i32) -> (i32, i32) {
    %c0_i32 = arith.constant 0 : i32
    %c0_i32_0 = arith.constant 0 : i32
    %c0_i32_1 = arith.constant 0 : i32
    return %c0_i32, %c0_i32_0 : i32, i32
  }
  func.func @transform_2(%arg0: i32) -> (i32, i32) {
    %c0_i32 = arith.constant 0 : i32
    %c0_i32_0 = arith.constant 0 : i32
    %c0_i32_1 = arith.constant 0 : i32
    return %c0_i32, %c0_i32_0 : i32, i32
  }
  func.func @transform_3(%arg0: i32) -> (i32, i32) {
    %c0_i32 = arith.constant 0 : i32
    %c0_i32_0 = arith.constant 0 : i32
    %c0_i32_1 = arith.constant 0 : i32
    return %c0_i32, %c0_i32_0 : i32, i32
  }
  func.func @transform_4(%arg0: i32) -> (i32, i32) {
    %c0_i32 = arith.constant 0 : i32
    %c0_i32_0 = arith.constant 0 : i32
    %c0_i32_1 = arith.constant 0 : i32
    return %c0_i32, %c0_i32_0 : i32, i32
  }
  func.func @transform_5(%arg0: i32) -> (i32, i32) {
    %c0_i32 = arith.constant 0 : i32
    %c0_i32_0 = arith.constant 0 : i32
    return %arg0, %c0_i32 : i32, i32
  }
}

</mosaic_0001>

<bundles_post_ra>
// kernel: tpu_custom_call.1
= control target key start
LH: loop header
LB: loop body
LE: loop exit
PB: predicated region body
PF: predicated region fallthrough
CT: control target
= control target key end

     0   :  { %10 = vsyncpa [#allocation3], 0  ;;  %s3083_s0 = inlined_call_operand.hbm [shape: f32[512,128], index: 0, kind: input, shape index: {}]   ;;  %s3084_s1 = inlined_call_operand.vmem [shape: f32[1,128], index: 1, kind: input, shape index: {}]   ;;  %s3085_s2 = inlined_call_operand.vmem [shape: f32[1,128], index: 2, kind: input, shape index: {}]   ;;  %s3086_s3 = inlined_call_operand.hbm [shape: f32[128,128], index: 3, kind: input, shape index: {}]   ;;  %s3087_s4 = inlined_call_operand.vmem [shape: f32[1,128], index: 4, kind: input, shape index: {}]   ;;  %s3088_s5 = inlined_call_operand.hbm [shape: f32[512,128], index: 5, kind: output, shape index: {}]  }
   0x1   :  { %12 = vsyncpa [#allocation3 + $0x1], 0 }
   0x2   :  { %13 = vsyncpa [#allocation6], 0 }
   0x3   :  { %14 = vsyncpa [#allocation4], 0 }
   0x4   :  { %16 = vsyncpa [#allocation4 + $0x1], 0  ;;  %s1951_s18 = smov 0   ;;  %s1953_s19 = smov 0  }
   0x5   :  { %s1955_s20 = smov 0   ;;  %s1957_s21 = smov 0  }
   0x6 LB: > { %s1972_s22 = sadd.s32 4294967295, %s1912_s21   ;;  %s1388_s23 = sadd.s32 4294967294, %s1912_s21   ;;  %s1912_s21 = sphi %s1957_s21, %s3128_s21   ;;  %s1908_s20 = sphi %s1955_s20, %s3127_s20   ;;  %s1904_s19 = sphi %s1953_s19, %s3126_s19   ;;  %s1900_s18 = sphi %s1951_s18, %s3125_s18  }
   0x7   : > { %p42_p0 = scmp.ne.s32.totalorder %s1904_s19, %s1900_s18  ;;  %p3089_p1 = scmp.eq.s32.totalorder %s1972_s22, 0 }
   0x8   : > { %p156_p3 = scmp.eq.s32.totalorder %s1388_s23, 1  ;;  %p1389_p5 = scmp.ge.s32.totalorder %s1912_s21, 1 }
   0x9   : > { %p1981_p4 = por %p3089_p1, %p42_p0  ;;  %p163_p7 = scmp.lt.s32.totalorder %s1912_s21, 3 }
   0xa   : > { %p1986_p6 = por %p156_p3, %p42_p0  ;;  %s1914_s27 = smov [#allocation5]  }
   0xb   : > { %s3099_s24 = scalar_select %p1981_p4, 1, 0 }
   0xc   : > { %s3100_s25 = scalar_select %p1986_p6, 1, 0 }
   0xd   : > { %p1991_p8 = pnand %p1389_p5, %p163_p7  ;;  %s181_s28 = sshll.u32 %s1914_s27, 4  ;;  %s182_s28 = int_to_ptr.vmem [resolvable:$true] %s181_s28 }
   0xe   : > { %s2005_s30 = sadd.s32 1, %s1912_s21   ;;  %s29_s6 = sadd.s32 1, %s1908_s20 }
   0xf   : > { %s3101_s26 = scalar_select %p1991_p8, 1, 0 }
  0x10   : > { %p1577_p9 = pneg %p1991_p8  ;;  %s26_s7 = ssub.s32 %s1912_s21, %s2005_s30 }
  0x11   : > { %s1801_s8 = scalar_lea.vmem %s182_s28, 2048  ;;  %p1809_p5 = scmp.lt.s32.totalorder %s182_s28, %s182_s28 }
  0x12   : > { %p2000_p11 = pnand %p1577_p9, %p3089_p1  ;;  %p1802_p13 = scmp.ne.s32.totalorder %s182_s28, %s1801_s8 }
  0x13   : > { %p1810_p7 = scmp.lt.s32.totalorder %s1801_s8, %s1801_s8 }
  0x14   : > { %p1792_p12 = pneg %p2000_p11 }
  0x15   : > { %p1811_p10 = por %p1810_p7, %p1809_p5 }
  0x16   : > { %p1804_p0 = pnand %p1802_p13, %p1792_p12 }
  0x18   : > { %p1805_p3 = pneg %p1804_p0 }
  0x1a   : > { %p1812_p2 = pnand %p1811_p10, %p1805_p3 }
  0x1c   : > { %1815 = shalt.err (!%p1812_p2)
}
  0x1d   : > { %s3090_s9 = smov 128   ;;  %s1916_s10 = smov 8  }
  0x1e   : > { %1580 = dma.hbm_to_vmem [thread:$0]  (!%p2000_p11), %s3086_s3, 2048, %s182_s28, [#allocation6], %s3090_s9, %s3090_s9, %s1916_s10  }
  0x1f   : > { %p27_p2 = scmp.eq.s32.totalorder %s26_s7, 0  ;;  %p36_p9 = scmp.ne.s32.totalorder %s1908_s20, %s1904_s19 }
  0x20   : > { %p37_p10 = scmp.eq.s32.totalorder %s1912_s21, 0  ;;  %p1590_p12 = scmp.lt.s32.totalorder %s1912_s21, 2 }
  0x21   : > { %s2025_s13 = scalar_select %p27_p2, %s1908_s20, %s29_s6  }
  0x22   : > { %p38_p13 = por %p37_p10, %p36_p9  ;;  %p3103_p0 = scmp.eq.s32.totalorder %s1972_s22, 1 }
  0x23   : > { %s198_s15 = sand.u32 1, %s1908_s20   ;;  %s1407_s16 = sshll.u32 %s1912_s21, 12 }
  0x24   : > { %p2029_p3 = por %p3103_p0, %p36_p9  ;;  %s1392_s17 = sshll.u32 %s198_s15, 8 }
  0x25   : > { %s2038_s29 = scalar_lea.hbm %s3083_s0, %s1407_s16  ;;  %s202_s28 = scalar_lea.vmem [#allocation2], %s1392_s17 }
  0x26   : > { %s3104_s14 = scalar_select %p2029_p3, 1, 0 }
  0x27   : > { %s209_s6 = sshll.u32 %s202_s28, 4  ;;  %p2040_p11 = pnand %p1590_p12, %p38_p13  ;;  %s2044_s6 = int_to_ptr.vmem [resolvable:$true] %s209_s6 }
  0x28   : > { %s2046_s8 = scalar_lea.sflag [#allocation3], %s198_s15  ;;  %s1816_s11 = scalar_lea.hbm %s2038_s29, 4096 }
  0x29   : > { %p1817_p5 = scmp.ne.s32.totalorder %s2038_s29, %s1816_s11  ;;  %p1818_p7 = pneg %p2040_p11 }
  0x2a   : > { %s1821_s17 = scalar_lea.hbm %s3083_s0, 8192  ;;  %p1822_p10 = scmp.lt.s32.totalorder %s2038_s29, %s3083_s0 }
  0x2b   : > { %p1819_p2 = pnand %p1818_p7, %p1817_p5  ;;  %p1823_p12 = scmp.lt.s32.totalorder %s1821_s17, %s1816_s11 }
  0x2d   : > { %p1820_p9 = pneg %p1819_p2  ;;  %p1824_p13 = por %p1823_p12, %p1822_p10 }
  0x2f   : > { %p1825_p0 = pnand %p1824_p13, %p1820_p9 }
  0x31   : > { %1828 = shalt.err (!%p1825_p0)
}
  0x32   : > { %s1829_s15 = scalar_lea.vmem %s2044_s6, 4096  ;;  %s1917_s28 = smov [#allocation2]  }
  0x33   : > { %p1830_p1 = scmp.ne.s32.totalorder %s2044_s6, %s1829_s15  ;;  %s1834_s9 = sshll.u32 %s1917_s28, 4  ;;  %s1835_s9 = int_to_ptr.vmem [resolvable:$false] %s1834_s9 }
  0x34   : > { %s1836_s12 = scalar_lea.vmem %s1835_s9, 8192  ;;  %p1837_p2 = scmp.lt.s32.totalorder %s2044_s6, %s1835_s9 }
  0x35   : > { %p1832_p6 = pnand %p1830_p1, %p1818_p7  ;;  %p1838_p3 = scmp.lt.s32.totalorder %s1836_s12, %s1829_s15 }
  0x37   : > { %p1833_p5 = pneg %p1832_p6  ;;  %p1839_p4 = por %p1838_p3, %p1837_p2 }
  0x39   : > { %p1840_p8 = pnand %p1839_p4, %p1833_p5 }
  0x3b   : > { %1843 = shalt.err (!%p1840_p8)
}
  0x3c   : > { %s3106_s11 = smov 128   ;;  %p3107_p1 = scmp.ne.s32.totalorder %s3101_s26, 0 }
  0x3d   : > { %1584 = dma.hbm_to_vmem [thread:$0]  (!%p2040_p11), %s2038_s29, 4096, %s2044_s6, %s2046_s8, %s3106_s11, %s3106_s11, %s1916_s10  }
  0x3e   : > { %221 = sbr.rel (%p3107_p1) target bundleno = 700 (0x2bc), region = 40 }
  0x43   : > { %s2073_s16 = sand.u32 1, %s1904_s19   ;;  %p3108_p4 = scmp.ne.s32.totalorder %s3099_s24, 0 }
  0x44   : > { %s1396_s9 = sshll.u32 %s2073_s16, 8  ;;  %s224_s17 = scalar_lea.sflag [#allocation3], %s2073_s16 }
  0x45   : > { %s2079_s7 = scalar_lea.vmem [#allocation2], %s1396_s9 }
  0x46   : > { %1887 = dma.done.wait (%p3108_p4), %s224_s17, 4096  }
  0x47   : > { %1889 = vsyncadd (%p3108_p4), %s224_s17, 4294963200  ;;  %p3109_p6 = scmp.eq.s32.totalorder %s1972_s22, 0 }
  0x49   : > { %1891 = dma.done.wait (%p3109_p6), [#allocation6], 2048   ;;  %p3110_p8 = pmov %p3109_p6 }
  0x4a   : > { %v2090_v0 = vld [vmem:[%s2079_s7] sm:$0xff]  ;;  %v2093_v1 = vld [vmem:[%s2079_s7 + $0x8] sm:$0xff]  ;;  %v2106_v4 = vld [vmem:[%s2079_s7 + $0x10] sm:$0xff]  ;;  %s2938_s23 = scalar_lea.vmem [#allocation7], %s1396_s9  ;;  %s1408_s27 = sshll.u32 %s1972_s22, 12 }
  0x4b   : > { %1893 = vsyncadd (%p3110_p8), [#allocation6], 4294965248  ;;  %292 = vadd.xlane.f32.xlu0 %v2090_v0  ;;  %294 = vadd.xlane.f32.xlu1 %v2093_v1  ;;  %v2098_v2 = vld [vmem:[%s2079_s7 + $0x80] sm:$0xff]  ;;  %v2101_v3 = vld [vmem:[%s2079_s7 + $0x88] sm:$0xff]  ;;  %s1305_s15 = sshll.u32 %s2938_s23, 4  ;;  %s3034_s11 = scalar_lea.hbm %s3088_s5, %s1408_s27  ;;  %s3036_s15 = int_to_ptr.vmem [resolvable:$true] %s1305_s15 }
  0x4c   : > { %v2109_v5 = vld [vmem:[%s2079_s7 + $0x90] sm:$0xff]  ;;  %v2114_v6 = vld [vmem:[%s2079_s7 + $0x18] sm:$0xff]  ;;  %v2122_v8 = vld [vmem:[%s2079_s7 + $0x20] sm:$0xff]  ;;  %s1292_s22 = scalar_lea.sflag [#allocation4], %s2073_s16  ;;  %s1844_s9 = scalar_lea.vmem %s3036_s15, 4096 }
  0x4d   : > { %v2117_v7 = vld [vmem:[%s2079_s7 + $0x98] sm:$0xff]  ;;  %v2125_v9 = vld [vmem:[%s2079_s7 + $0xa0] sm:$0xff]  ;;  %v2130_v10 = vld [vmem:[%s2079_s7 + $0x28] sm:$0xff]  ;;  %p1845_p3 = scmp.ne.s32.totalorder %s3036_s15, %s1844_s9  ;;  %p3122_p11 = scmp.ne.s32.totalorder %s3104_s14, 0 }
  0x4e   : > { %v2133_v11 = vld [vmem:[%s2079_s7 + $0xa8] sm:$0xff]  ;;  %v2138_v12 = vld [vmem:[%s2079_s7 + $0x30] sm:$0xff]  ;;  %v2146_v14 = vld [vmem:[%s2079_s7 + $0x38] sm:$0xff]  ;;  %s1918_s17 = smov [#allocation7]  }
  0x4f   : > { %324 = vadd.xlane.f32.xlu0 %v2098_v2  ;;  %326 = vadd.xlane.f32.xlu1 %v2101_v3  ;;  %v2141_v13 = vld [vmem:[%s2079_s7 + $0xb0] sm:$0xff]  ;;  %v2149_v15 = vld [vmem:[%s2079_s7 + $0xb8] sm:$0xff]  ;;  %v2154_v16 = vld [vmem:[%s2079_s7 + $0x40] sm:$0xff]  ;;  %p1846_p7 = pnand %p1845_p3, %p3122_p11  ;;  %s1848_s24 = sshll.u32 %s1918_s17, 4  ;;  %s1849_s24 = int_to_ptr.vmem [resolvable:$false] %s1848_s24 }
  0x50   : > { %v2157_v17 = vld [vmem:[%s2079_s7 + $0xc0] sm:$0xff]  ;;  %v2162_v18 = vld [vmem:[%s2079_s7 + $0x48] sm:$0xff]  ;;  %v2170_v20 = vld [vmem:[%s2079_s7 + $0x50] sm:$0xff]  ;;  %s1850_s26 = scalar_lea.vmem %s1849_s24, 8192  ;;  %p1851_p10 = scmp.lt.s32.totalorder %s3036_s15, %s1849_s24 }
  0x51   : > { %v2165_v19 = vld [vmem:[%s2079_s7 + $0xc8] sm:$0xff]  ;;  %v2173_v21 = vld [vmem:[%s2079_s7 + $0xd0] sm:$0xff]  ;;  %v2178_v22 = vld [vmem:[%s2079_s7 + $0x58] sm:$0xff]  ;;  %p1847_p9 = pneg %p1846_p7  ;;  %p1852_p12 = scmp.lt.s32.totalorder %s1850_s26, %s1844_s9 }
  0x52   : > { %v2181_v23 = vld [vmem:[%s2079_s7 + $0xd8] sm:$0xff]  ;;  %v2186_v24 = vld [vmem:[%s2079_s7 + $0x60] sm:$0xff]  ;;  %v2194_v26 = vld [vmem:[%s2079_s7 + $0x68] sm:$0xff] }
  0x53   : > { %296 = vadd.xlane.f32.xlu0 %v2106_v4  ;;  %328 = vadd.xlane.f32.xlu1 %v2109_v5  ;;  %v2189_v25 = vld [vmem:[%s2079_s7 + $0xe0] sm:$0xff]  ;;  %v2197_v27 = vld [vmem:[%s2079_s7 + $0xe8] sm:$0xff]  ;;  %v2202_v28 = vld [vmem:[%s2079_s7 + $0x70] sm:$0xff]  ;;  %p1853_p13 = por %p1852_p12, %p1851_p10 }
  0x54   : > { %v2205_v29 = vld [vmem:[%s2079_s7 + $0xf0] sm:$0xff]  ;;  %v2210_v30 = vld [vmem:[%s2079_s7 + $0x78] sm:$0xff] }
  0x55   : > { %v2213_v31 = vld [vmem:[%s2079_s7 + $0xf8] sm:$0xff]  ;;  %p1854_p0 = pnand %p1853_p13, %p1847_p9 }
  0x57   : > { %298 = vadd.xlane.f32.xlu0 %v2114_v6  ;;  %330 = vadd.xlane.f32.xlu1 %v2117_v7 }
  0x5b   : > { %300 = vadd.xlane.f32.xlu0 %v2122_v8  ;;  %332 = vadd.xlane.f32.xlu1 %v2125_v9 }
  0x5f   : > { %302 = vadd.xlane.f32.xlu0 %v2130_v10  ;;  %334 = vadd.xlane.f32.xlu1 %v2133_v11 }
  0x63   : > { %304 = vadd.xlane.f32.xlu0 %v2138_v12  ;;  %336 = vadd.xlane.f32.xlu1 %v2141_v13 }
  0x67   : > { %306 = vadd.xlane.f32.xlu0 %v2146_v14  ;;  %338 = vadd.xlane.f32.xlu1 %v2149_v15 }
  0x6b   : > { %308 = vadd.xlane.f32.xlu0 %v2154_v16  ;;  %340 = vadd.xlane.f32.xlu1 %v2157_v17 }
  0x6f   : > { %310 = vadd.xlane.f32.xlu0 %v2162_v18  ;;  %342 = vadd.xlane.f32.xlu1 %v2165_v19 }
  0x73   : > { %312 = vadd.xlane.f32.xlu0 %v2170_v20  ;;  %344 = vadd.xlane.f32.xlu1 %v2173_v21 }
  0x77   : > { %314 = vadd.xlane.f32.xlu0 %v2178_v22  ;;  %346 = vadd.xlane.f32.xlu1 %v2181_v23 }
  0x7b   : > { %316 = vadd.xlane.f32.xlu0 %v2186_v24  ;;  %348 = vadd.xlane.f32.xlu1 %v2189_v25 }
  0x7f   : > { %318 = vadd.xlane.f32.xlu0 %v2194_v26  ;;  %350 = vadd.xlane.f32.xlu1 %v2197_v27 }
  0x83   : > { %320 = vadd.xlane.f32.xlu0 %v2202_v28  ;;  %352 = vadd.xlane.f32.xlu1 %v2205_v29 }
  0x87   : > { %322 = vadd.xlane.f32.xlu0 %v2210_v30  ;;  %354 = vadd.xlane.f32.xlu1 %v2213_v31 }
  0xd4   : > { %v293_v32 = vpop.xlane.xlu0 %292  ;;  %v295_v33 = vpop.xlane.xlu1 %294 }
  0xd5   : > { %v357_v34 = vmul.f32 0.0078125, %v293_v32  ;;  %v358_v35 = vmul.f32 0.0078125, %v295_v33 }
  0xd7   : > { %v2218_v36 = vsub.f32 %v2090_v0, %v357_v34  ;;  %v2221_v37 = vsub.f32 %v2093_v1, %v358_v35 }
  0xd8   : > { %v325_v38 = vpop.xlane.xlu0 %324  ;;  %v327_v39 = vpop.xlane.xlu1 %326 }
  0xd9   : > { %v373_v40 = vmul.f32 0.0078125, %v325_v38  ;;  %v421_v41 = vmul.f32 %v2218_v36, %v2218_v36  ;;  %v374_v42 = vmul.f32 0.0078125, %v327_v39  ;;  %v422_v45 = vmul.f32 %v2221_v37, %v2221_v37 }
  0xdb   : > { %v2226_v43 = vsub.f32 %v2098_v2, %v373_v40  ;;  %453 = vadd.xlane.f32.xlu0 %v421_v41  ;;  %v2229_v44 = vsub.f32 %v2101_v3, %v374_v42 }
  0xdc   : > { %v297_v46 = vpop.xlane.xlu0 %296  ;;  %v329_v47 = vpop.xlane.xlu1 %328 }
  0xdd   : > { %v359_v48 = vmul.f32 0.0078125, %v297_v46  ;;  %v437_v49 = vmul.f32 %v2226_v43, %v2226_v43  ;;  %v375_v50 = vmul.f32 0.0078125, %v329_v47  ;;  %v438_v53 = vmul.f32 %v2229_v44, %v2229_v44 }
  0xdf   : > { %v2236_v51 = vsub.f32 %v2106_v4, %v359_v48  ;;  %455 = vadd.xlane.f32.xlu0 %v422_v45  ;;  %485 = vadd.xlane.f32.xlu1 %v437_v49  ;;  %v2239_v52 = vsub.f32 %v2109_v5, %v375_v50 }
  0xe0   : > { %v299_v54 = vpop.xlane.xlu0 %298  ;;  %v331_v55 = vpop.xlane.xlu1 %330 }
  0xe1   : > { %v360_v56 = vmul.f32 0.0078125, %v299_v54  ;;  %v423_v57 = vmul.f32 %v2236_v51, %v2236_v51  ;;  %v376_v58 = vmul.f32 0.0078125, %v331_v55  ;;  %v439_v61 = vmul.f32 %v2239_v52, %v2239_v52  ;;  %v994_v54 = vld [vmem:[#allocation5 + $0x78] sm:$0xff] }
  0xe2   : > { %1457 = vmatprep.subr.mxu0 %v994_v54  ;;  %1537 = vmatprep.subr.mxu1 %v994_v54 }
  0xe3   : > { %v2246_v59 = vsub.f32 %v2114_v6, %v360_v56  ;;  %487 = vadd.xlane.f32.xlu1 %v438_v53  ;;  %457 = vadd.xlane.f32.xlu0 %v423_v57  ;;  %v2249_v60 = vsub.f32 %v2117_v7, %v376_v58 }
  0xe4   : > { %v301_v62 = vpop.xlane.xlu0 %300  ;;  %v333_v63 = vpop.xlane.xlu1 %332  ;;  %1458 = vmatpush3.msra.mxu0 %v994_v54  ;;  %1553 = vmatpush3.msra.mxu1 %v994_v54 }
  0xe5   : > { %v361_v0 = vmul.f32 0.0078125, %v301_v62  ;;  %v424_v1 = vmul.f32 %v2246_v59, %v2246_v59  ;;  %v377_v2 = vmul.f32 0.0078125, %v333_v63  ;;  %v440_v5 = vmul.f32 %v2249_v60, %v2249_v60 }
  0xe7   : > { %v2256_v3 = vsub.f32 %v2122_v8, %v361_v0  ;;  %489 = vadd.xlane.f32.xlu1 %v439_v61  ;;  %459 = vadd.xlane.f32.xlu0 %v424_v1  ;;  %v2259_v4 = vsub.f32 %v2125_v9, %v377_v2  ;;  %v992_v0 = vld [vmem:[#allocation5 + $0x68] sm:$0xff] }
  0xe8   : > { %v303_v6 = vpop.xlane.xlu0 %302  ;;  %v335_v7 = vpop.xlane.xlu1 %334 }
  0xe9   : > { %v362_v32 = vmul.f32 0.0078125, %v303_v6  ;;  %v425_v33 = vmul.f32 %v2256_v3, %v2256_v3  ;;  %v378_v34 = vmul.f32 0.0078125, %v335_v7  ;;  %v441_v9 = vmul.f32 %v2259_v4, %v2259_v4 }
  0xeb   : > { %v2266_v35 = vsub.f32 %v2130_v10, %v362_v32  ;;  %491 = vadd.xlane.f32.xlu1 %v440_v5  ;;  %461 = vadd.xlane.f32.xlu0 %v425_v33  ;;  %v2269_v8 = vsub.f32 %v2133_v11, %v378_v34  ;;  %v990_v34 = vld [vmem:[#allocation5 + $0x58] sm:$0xff] }
  0xec   : > { %v305_v38 = vpop.xlane.xlu0 %304  ;;  %v337_v39 = vpop.xlane.xlu1 %336 }
  0xed   : > { %v363_v40 = vmul.f32 0.0078125, %v305_v38  ;;  %v426_v41 = vmul.f32 %v2266_v35, %v2266_v35  ;;  %v379_v42 = vmul.f32 0.0078125, %v337_v39  ;;  %v442_v11 = vmul.f32 %v2269_v8, %v2269_v8 }
  0xef   : > { %v2276_v45 = vsub.f32 %v2138_v12, %v363_v40  ;;  %493 = vadd.xlane.f32.xlu1 %v441_v9  ;;  %463 = vadd.xlane.f32.xlu0 %v426_v41  ;;  %v2279_v10 = vsub.f32 %v2141_v13, %v379_v42 }
  0xf0   : > { %v307_v46 = vpop.xlane.xlu0 %306  ;;  %v339_v47 = vpop.xlane.xlu1 %338 }
  0xf1   : > { %v364_v48 = vmul.f32 0.0078125, %v307_v46  ;;  %v427_v49 = vmul.f32 %v2276_v45, %v2276_v45  ;;  %v380_v50 = vmul.f32 0.0078125, %v339_v47  ;;  %v443_v13 = vmul.f32 %v2279_v10, %v2279_v10 }
  0xf3   : > { %v2286_v53 = vsub.f32 %v2146_v14, %v364_v48  ;;  %495 = vadd.xlane.f32.xlu1 %v442_v11  ;;  %465 = vadd.xlane.f32.xlu0 %v427_v49  ;;  %v2289_v12 = vsub.f32 %v2149_v15, %v380_v50  ;;  %v993_v14 = vld [vmem:[#allocation5 + $0x70] sm:$0xff] }
  0xf4   : > { %v309_v55 = vpop.xlane.xlu0 %308  ;;  %v341_v56 = vpop.xlane.xlu1 %340  ;;  %1459 = vmatprep.subr.mxu0 %v993_v14  ;;  %1538 = vmatprep.subr.mxu1 %v993_v14  ;;  %v989_v50 = vld [vmem:[#allocation5 + $0x50] sm:$0xff] }
  0xf5   : > { %v365_v57 = vmul.f32 0.0078125, %v309_v55  ;;  %v428_v58 = vmul.f32 %v2286_v53, %v2286_v53  ;;  %v381_v61 = vmul.f32 0.0078125, %v341_v56  ;;  %v444_v63 = vmul.f32 %v2289_v12, %v2289_v12  ;;  %1460 = vmatpush3.msra.mxu0 %v993_v14  ;;  %1554 = vmatpush3.msra.mxu1 %v993_v14  ;;  %v988_v56 = vld [vmem:[#allocation5 + $0x48] sm:$0xff] }
  0xf6   : > { %1461 = vmatprep.subr.mxu0 %v992_v0  ;;  %1539 = vmatprep.subr.mxu1 %v992_v0 }
  0xf7   : > { %v2296_v15 = vsub.f32 %v2154_v16, %v365_v57  ;;  %497 = vadd.xlane.f32.xlu1 %v443_v13  ;;  %467 = vadd.xlane.f32.xlu0 %v428_v58  ;;  %v2299_v62 = vsub.f32 %v2157_v17, %v381_v61  ;;  %v991_v16 = vld [vmem:[#allocation5 + $0x60] sm:$0xff] }
  0xf8   : > { %v311_v1 = vpop.xlane.xlu0 %310  ;;  %v343_v2 = vpop.xlane.xlu1 %342  ;;  %1462 = vmatpush3.msra.mxu0 %v992_v0  ;;  %1555 = vmatpush3.msra.mxu1 %v992_v0 }
  0xf9   : > { %v366_v5 = vmul.f32 0.0078125, %v311_v1  ;;  %v429_v6 = vmul.f32 %v2296_v15, %v2296_v15  ;;  %v382_v7 = vmul.f32 0.0078125, %v343_v2  ;;  %v445_v33 = vmul.f32 %v2299_v62, %v2299_v62  ;;  %1463 = vmatprep.subr.mxu0 %v991_v16  ;;  %1540 = vmatprep.subr.mxu1 %v991_v16 }
  0xfa   : > { %1464 = vmatpush3.msra.mxu0 %v991_v16  ;;  %1556 = vmatpush3.msra.mxu1 %v991_v16 }
  0xfb   : > { %v2306_v17 = vsub.f32 %v2162_v18, %v366_v5  ;;  %499 = vadd.xlane.f32.xlu1 %v444_v63  ;;  %469 = vadd.xlane.f32.xlu0 %v429_v6  ;;  %v2309_v32 = vsub.f32 %v2165_v19, %v382_v7  ;;  %v987_v6 = vld [vmem:[#allocation5 + $0x40] sm:$0xff] }
  0xfc   : > { %v313_v9 = vpop.xlane.xlu0 %312  ;;  %v345_v38 = vpop.xlane.xlu1 %344  ;;  %1465 = vmatprep.subr.mxu0 %v990_v34  ;;  %1541 = vmatprep.subr.mxu1 %v990_v34 }
  0xfd   : > { %v367_v39 = vmul.f32 0.0078125, %v313_v9  ;;  %v430_v40 = vmul.f32 %v2306_v17, %v2306_v17  ;;  %v383_v41 = vmul.f32 0.0078125, %v345_v38  ;;  %v446_v42 = vmul.f32 %v2309_v32, %v2309_v32  ;;  %1466 = vmatpush3.msra.mxu0 %v990_v34  ;;  %1557 = vmatpush3.msra.mxu1 %v990_v34  ;;  %v986_v34 = vld [vmem:[#allocation5 + $0x38] sm:$0xff] }
  0xfe   : > { %1467 = vmatprep.subr.mxu0 %v989_v50  ;;  %1542 = vmatprep.subr.mxu1 %v989_v50 }
  0xff   : > { %v2316_v18 = vsub.f32 %v2170_v20, %v367_v39  ;;  %501 = vadd.xlane.f32.xlu1 %v445_v33  ;;  %471 = vadd.xlane.f32.xlu0 %v430_v40  ;;  %v2319_v19 = vsub.f32 %v2173_v21, %v383_v41 }
 0x100   : > { %v315_v11 = vpop.xlane.xlu0 %314  ;;  %v347_v46 = vpop.xlane.xlu1 %346  ;;  %1468 = vmatpush3.msra.mxu0 %v989_v50  ;;  %1558 = vmatpush3.msra.mxu1 %v989_v50 }
 0x101   : > { %v368_v47 = vmul.f32 0.0078125, %v315_v11  ;;  %v431_v48 = vmul.f32 %v2316_v18, %v2316_v18  ;;  %v384_v49 = vmul.f32 0.0078125, %v347_v46  ;;  %v447_v13 = vmul.f32 %v2319_v19, %v2319_v19  ;;  %1469 = vmatprep.subr.mxu0 %v988_v56  ;;  %1543 = vmatprep.subr.mxu1 %v988_v56 }
 0x102   : > { %1470 = vmatpush3.msra.mxu0 %v988_v56  ;;  %1559 = vmatpush3.msra.mxu1 %v988_v56  ;;  %v980_v56 = vld [vmem:[#allocation5 + $0x8] sm:$0xff] }
 0x103   : > { %v2326_v20 = vsub.f32 %v2178_v22, %v368_v47  ;;  %503 = vadd.xlane.f32.xlu1 %v446_v42  ;;  %473 = vadd.xlane.f32.xlu0 %v431_v48  ;;  %v2329_v21 = vsub.f32 %v2181_v23, %v384_v49 }
 0x104   : > { %v317_v54 = vpop.xlane.xlu0 %316  ;;  %v349_v55 = vpop.xlane.xlu1 %348  ;;  %1471 = vmatprep.subr.mxu0 %v987_v6  ;;  %1544 = vmatprep.subr.mxu1 %v987_v6 }
 0x105   : > { %v369_v57 = vmul.f32 0.0078125, %v317_v54  ;;  %v432_v58 = vmul.f32 %v2326_v20, %v2326_v20  ;;  %v385_v61 = vmul.f32 0.0078125, %v349_v55  ;;  %v448_v14 = vmul.f32 %v2329_v21, %v2329_v21  ;;  %1472 = vmatpush3.msra.mxu0 %v987_v6  ;;  %1560 = vmatpush3.msra.mxu1 %v987_v6  ;;  %v982_v55 = vld [vmem:[#allocation5 + $0x18] sm:$0xff] }
 0x106   : > { %1473 = vmatprep.subr.mxu0 %v986_v34  ;;  %1545 = vmatprep.subr.mxu1 %v986_v34 }
 0x107   : > { %v2336_v22 = vsub.f32 %v2186_v24, %v369_v57  ;;  %505 = vadd.xlane.f32.xlu1 %v447_v13  ;;  %475 = vadd.xlane.f32.xlu0 %v432_v58  ;;  %v2339_v23 = vsub.f32 %v2189_v25, %v385_v61  ;;  %v983_v13 = vld [vmem:[#allocation5 + $0x20] sm:$0xff] }
 0x108   : > { %v319_v63 = vpop.xlane.xlu0 %318  ;;  %v351_v0 = vpop.xlane.xlu1 %350  ;;  %1474 = vmatpush3.msra.mxu0 %v986_v34  ;;  %1561 = vmatpush3.msra.mxu1 %v986_v34  ;;  %v979_v57 = vld [vmem:[#allocation5] sm:$0xff] }
 0x109   : > { %v370_v1 = vmul.f32 0.0078125, %v319_v63  ;;  %v433_v2 = vmul.f32 %v2336_v22, %v2336_v22  ;;  %v386_v5 = vmul.f32 0.0078125, %v351_v0  ;;  %v449_v7 = vmul.f32 %v2339_v23, %v2339_v23 }
 0x10b   : > { %v2346_v24 = vsub.f32 %v2194_v26, %v370_v1  ;;  %507 = vadd.xlane.f32.xlu1 %v448_v14  ;;  %477 = vadd.xlane.f32.xlu0 %v433_v2  ;;  %v2349_v25 = vsub.f32 %v2197_v27, %v386_v5  ;;  %v985_v26 = vld [vmem:[#allocation5 + $0x30] sm:$0xff] }
 0x10c   : > { %v321_v16 = vpop.xlane.xlu0 %320  ;;  %v353_v33 = vpop.xlane.xlu1 %352  ;;  %1475 = vmatprep.subr.mxu0 %v985_v26  ;;  %1546 = vmatprep.subr.mxu1 %v985_v26 }
 0x10d   : > { %3111 = vst [vmem:[#allocation11_spill] sm:$0xff] %v2349_v25  ;;  %v371_v9 = vmul.f32 0.0078125, %v321_v16  ;;  %v434_v38 = vmul.f32 %v2346_v24, %v2346_v24  ;;  %v387_v39 = vmul.f32 0.0078125, %v353_v33  ;;  %v450_v41 = vmul.f32 %v2349_v25, %v2349_v25  ;;  %1476 = vmatpush3.msra.mxu0 %v985_v26  ;;  %1562 = vmatpush3.msra.mxu1 %v985_v26 }
 0x10f   : > { %v2356_v27 = vsub.f32 %v2202_v28, %v371_v9  ;;  %509 = vadd.xlane.f32.xlu1 %v449_v7  ;;  %479 = vadd.xlane.f32.xlu0 %v434_v38  ;;  %v2359_v40 = vsub.f32 %v2205_v29, %v387_v39  ;;  %v984_v28 = vld [vmem:[#allocation5 + $0x28] sm:$0xff] }
 0x110   : > { %v323_v42 = vpop.xlane.xlu0 %322  ;;  %v355_v11 = vpop.xlane.xlu1 %354  ;;  %1477 = vmatprep.subr.mxu0 %v984_v28  ;;  %1547 = vmatprep.subr.mxu1 %v984_v28 }
 0x111   : > { %3112 = vst [vmem:[#allocation12_spill] sm:$0xff] %v2356_v27  ;;  %3113 = vst [vmem:[#allocation13_spill] sm:$0xff] %v2359_v40  ;;  %v372_v46 = vmul.f32 0.0078125, %v323_v42  ;;  %v435_v47 = vmul.f32 %v2356_v27, %v2356_v27  ;;  %v388_v48 = vmul.f32 0.0078125, %v355_v11  ;;  %v451_v50 = vmul.f32 %v2359_v40, %v2359_v40  ;;  %1478 = vmatpush3.msra.mxu0 %v984_v28 }
 0x112   : > { %1563 = vmatpush3.msra.mxu1 %v984_v28  ;;  %1479 = vmatprep.subr.mxu0 %v983_v13 }
 0x113   : > { %v2366_v29 = vsub.f32 %v2210_v30, %v372_v46  ;;  %511 = vadd.xlane.f32.xlu1 %v450_v41  ;;  %481 = vadd.xlane.f32.xlu0 %v435_v47  ;;  %v2369_v49 = vsub.f32 %v2213_v31, %v388_v48  ;;  %v981_v31 = vld [vmem:[#allocation5 + $0x10] sm:$0xff] }
 0x114   : > { %1548 = vmatprep.subr.mxu1 %v983_v13  ;;  %1480 = vmatpush3.msra.mxu0 %v983_v13 }
 0x115   : > { %3114 = vst [vmem:[#allocation14_spill] sm:$0xff] %v2366_v29  ;;  %3115 = vst [vmem:[#allocation15_spill] sm:$0xff] %v2369_v49  ;;  %v436_v54 = vmul.f32 %v2366_v29, %v2366_v29  ;;  %v452_v30 = vmul.f32 %v2369_v49, %v2369_v49  ;;  %1564 = vmatpush3.msra.mxu1 %v983_v13  ;;  %1481 = vmatprep.subr.mxu0 %v982_v55 }
 0x116   : > { %1549 = vmatprep.subr.mxu1 %v982_v55  ;;  %1482 = vmatpush3.msra.mxu0 %v982_v55 }
 0x117   : > { %513 = vadd.xlane.f32.xlu1 %v451_v50  ;;  %483 = vadd.xlane.f32.xlu0 %v436_v54 }
 0x118   : > { %1565 = vmatpush3.msra.mxu1 %v982_v55  ;;  %1483 = vmatprep.subr.mxu0 %v981_v31 }
 0x119   : > { %1484 = vmatpush3.msra.mxu0 %v981_v31  ;;  %1550 = vmatprep.subr.mxu1 %v981_v31 }
 0x11a   : > { %1485 = vmatprep.subr.mxu0 %v980_v56  ;;  %1566 = vmatpush3.msra.mxu1 %v981_v31 }
 0x11b   : > { %515 = vadd.xlane.f32.xlu1 %v452_v30  ;;  %1486 = vmatpush3.msra.mxu0 %v980_v56 }
 0x11c   : > { %1551 = vmatprep.subr.mxu1 %v980_v56  ;;  %1487 = vmatprep.subr.mxu0 %v979_v57 }
 0x11d   : > { %1567 = vmatpush3.msra.mxu1 %v980_v56  ;;  %1488 = vmatpush3.msra.mxu0 %v979_v57 }
 0x11e   : > { %1552 = vmatprep.subr.mxu1 %v979_v57 }
 0x11f   : > { %1568 = vmatpush3.msra.mxu1 %v979_v57 }
 0x164   : > { %v454_v58 = vpop.xlane.xlu0 %453 }
 0x165   : > { %v2377_v61 = vmul.f32 0.007874016, %v454_v58 }
 0x167   : > { %1630 = vrsqrt.f32 %v2377_v61  ;;  %vm551_vm0 = vcmp.eq.f32.partialorder %v2377_v61, inf  ;;  %v554_v11 = vand.u32 2147483648, %v2377_v61  ;;  %vm553_vm3 = vcmp.eq.f32.partialorder %v2377_v61, 0.0 }
 0x168   : > { %v486_v14 = vpop.xlane.xlu1 %485  ;;  %v456_v63 = vpop.xlane.xlu0 %455 }
 0x169   : > { %v2379_v0 = vmul.f32 0.007874016, %v456_v63  ;;  %v2381_v1 = vmul.f32 0.007874016, %v486_v14 }
 0x16b   : > { %1632 = vrsqrt.f32 %v2379_v0  ;;  %vm558_vm1 = vcmp.eq.f32.partialorder %v2379_v0, inf  ;;  %vm560_vm2 = vcmp.eq.f32.partialorder %v2379_v0, 0.0  ;;  %v561_v50 = vand.u32 2147483648, %v2379_v0 }
 0x16c   : > { %v488_v2 = vpop.xlane.xlu1 %487  ;;  %v458_v5 = vpop.xlane.xlu0 %457  ;;  %1634 = vrsqrt.f32 %v2381_v1  ;;  %vm663_vm6 = vcmp.eq.f32.partialorder %v2381_v1, inf }
 0x16d   : > { %v2385_v6 = vmul.f32 0.007874016, %v488_v2  ;;  %v2387_v7 = vmul.f32 0.007874016, %v458_v5 }
 0x16f   : > { %1636 = vrsqrt.f32 %v2385_v6  ;;  %vm670_vm4 = vcmp.eq.f32.partialorder %v2385_v6, inf  ;;  %vm672_vm5 = vcmp.eq.f32.partialorder %v2385_v6, 0.0  ;;  %v673_v30 = vand.u32 2147483648, %v2385_v6 }
 0x170   : > { %1638 = vrsqrt.f32 %v2387_v7  ;;  %v490_v16 = vpop.xlane.xlu1 %489  ;;  %v460_v33 = vpop.xlane.xlu0 %459  ;;  %vm565_vm7 = vcmp.eq.f32.partialorder %v2387_v7, inf  ;;  %vm567_vm8 = vcmp.eq.f32.partialorder %v2387_v7, 0.0  ;;  %v568_v58 = vand.u32 2147483648, %v2387_v7 }
 0x171   : > { %v2392_v34 = vmul.f32 0.007874016, %v490_v16  ;;  %v2394_v9 = vmul.f32 0.007874016, %v460_v33 }
 0x173   : > { %1640 = vrsqrt.f32 %v2392_v34  ;;  %vm677_vm9 = vcmp.eq.f32.partialorder %v2392_v34, inf  ;;  %vm679_vm10 = vcmp.eq.f32.partialorder %v2392_v34, 0.0  ;;  %v680_v33 = vand.u32 2147483648, %v2392_v34 }
 0x174   : > { %1642 = vrsqrt.f32 %v2394_v9  ;;  %v492_v38 = vpop.xlane.xlu1 %491  ;;  %v462_v39 = vpop.xlane.xlu0 %461  ;;  %vm572_vm11 = vcmp.eq.f32.partialorder %v2394_v9, inf  ;;  %vm574_vm12 = vcmp.eq.f32.partialorder %v2394_v9, 0.0 }
 0x175   : > { %v2398_v26 = vmul.f32 0.007874016, %v492_v38  ;;  %v2400_v41 = vmul.f32 0.007874016, %v462_v39  ;;  %v1631_v42 = vpop.eup %1630  ;;  %v575_v39 = vand.u32 2147483648, %v2394_v9 }
 0x176   : > { %v550_v56 = vmul.f32 %v1631_v42, %v2377_v61 }
 0x177   : > { %1644 = vrsqrt.f32 %v2398_v26  ;;  %vm684_vm13 = vcmp.eq.f32.partialorder %v2398_v26, inf  ;;  %vm686_vm14 = vcmp.eq.f32.partialorder %v2398_v26, 0.0  ;;  %vm579_vm15 = vcmp.eq.f32.partialorder %v2400_v41, inf }
 0x178   : > { %1646 = vrsqrt.f32 %v2400_v41  ;;  %v494_v47 = vpop.xlane.xlu1 %493  ;;  %v464_v48 = vpop.xlane.xlu0 %463 }
 0x179   : > { %v1633_v28 = vpop.eup %1632  ;;  %v2410_v13 = vmul.f32 0.007874016, %v494_v47  ;;  %v2412_v54 = vmul.f32 0.007874016, %v464_v48  ;;  %v552_v47 = vsel %vm551_vm0, %v2377_v61, %v550_v56  ;;  %v687_v56 = vand.u32 2147483648, %v2398_v26 }
 0x17a   : > { %v557_v55 = vmul.f32 %v1633_v28, %v2379_v0  ;;  %v1635_v31 = vpop.eup %1634  ;;  %vm581_vm0 = vcmp.eq.f32.partialorder %v2400_v41, 0.0 }
 0x17b   : > { %1648 = vrsqrt.f32 %v2410_v13 }
 0x17c   : > { %v1637_v57 = vpop.eup %1636  ;;  %1650 = vrsqrt.f32 %v2412_v54  ;;  %v496_v14 = vpop.xlane.xlu1 %495  ;;  %v559_v5 = vsel %vm558_vm1, %v2379_v0, %v557_v55  ;;  %v662_v55 = vmul.f32 %v1635_v31, %v2381_v1  ;;  %vm665_vm1 = vcmp.eq.f32.partialorder %v2381_v1, 0.0 }
 0x17d   : > { %v466_v63 = vpop.xlane.xlu0 %465  ;;  %v1639_v2 = vpop.eup %1638  ;;  %v669_v16 = vmul.f32 %v1637_v57, %v2385_v6  ;;  %v2437_v42 = vmul.f32 0.007874016, %v496_v14  ;;  %v562_v57 = vsel %vm560_vm2, %v561_v50, %v559_v5  ;;  %v582_v50 = vand.u32 2147483648, %v2400_v41 }
 0x17e   : > { %v564_v38 = vmul.f32 %v1639_v2, %v2387_v7  ;;  %v2458_v31 = vmul.f32 0.007874016, %v466_v63  ;;  %v774_v5 = vadd.f32 1e-06, %v562_v57  ;;  %vm691_vm2 = vcmp.eq.f32.partialorder %v2410_v13, inf }
 0x17f   : > { %v671_v48 = vsel %vm670_vm4, %v2385_v6, %v669_v16  ;;  %1652 = vrsqrt.f32 %v2437_v42  ;;  %vm586_vm4 = vcmp.eq.f32.partialorder %v2412_v54, inf }
 0x180   : > { %v1641_v28 = vpop.eup %1640  ;;  %v566_v14 = vsel %vm565_vm7, %v2387_v7, %v564_v38  ;;  %v498_v2 = vpop.xlane.xlu1 %497  ;;  %v674_v16 = vsel %vm672_vm5, %v673_v30, %v671_v48  ;;  %v555_v30 = vsel %vm553_vm3, %v554_v11, %v552_v47  ;;  %1654 = vrsqrt.f32 %v2458_v31 }
 0x181   : > { %v468_v46 = vpop.xlane.xlu0 %467  ;;  %v1643_v49 = vpop.eup %1642  ;;  %v676_v29 = vmul.f32 %v1641_v28, %v2392_v34  ;;  %v569_v38 = vsel %vm567_vm8, %v568_v58, %v566_v14  ;;  %v790_v48 = vadd.f32 1e-06, %v674_v16  ;;  %vm693_vm3 = vcmp.eq.f32.partialorder %v2410_v13, 0.0 }
 0x182   : > { %v571_v0 = vmul.f32 %v1643_v49, %v2394_v9  ;;  %v664_v49 = vsel %vm663_vm6, %v2381_v1, %v662_v55  ;;  %v775_v47 = vadd.f32 1e-06, %v569_v38  ;;  %1656 = vrcp.f32 %v774_v5 }
 0x183   : > { %v678_v6 = vsel %vm677_vm9, %v2392_v34, %v676_v29  ;;  %1658 = vrcp.f32 %v790_v48  ;;  %vm588_vm5 = vcmp.eq.f32.partialorder %v2412_v54, 0.0  ;;  %vm698_vm6 = vcmp.eq.f32.partialorder %v2437_v42, inf }
 0x184   : > { %v1645_v63 = vpop.eup %1644  ;;  %v681_v28 = vsel %vm679_vm10, %v680_v33, %v678_v6  ;;  %v573_v7 = vsel %vm572_vm11, %v2394_v9, %v571_v0  ;;  %v500_v58 = vpop.xlane.xlu1 %499  ;;  %v2487_v33 = vmul.f32 0.007874016, %v498_v2  ;;  %vm700_vm7 = vcmp.eq.f32.partialorder %v2437_v42, 0.0 }
 0x185   : > { %v470_v29 = vpop.xlane.xlu0 %469  ;;  %v1647_v57 = vpop.eup %1646  ;;  %v576_v61 = vsel %vm574_vm12, %v575_v39, %v573_v7  ;;  %v683_v11 = vmul.f32 %v1645_v63, %v2398_v26  ;;  %v791_v55 = vadd.f32 1e-06, %v681_v28  ;;  %v694_v39 = vand.u32 2147483648, %v2410_v13 }
 0x186   : > { %v578_v34 = vmul.f32 %v1647_v57, %v2400_v41  ;;  %v776_v16 = vadd.f32 1e-06, %v576_v61  ;;  %1660 = vrsqrt.f32 %v2487_v33  ;;  %v2502_v28 = vmul.f32 0.007874016, %v468_v46 }
 0x187   : > { %v685_v9 = vsel %vm684_vm13, %v2398_v26, %v683_v11  ;;  %1662 = vrcp.f32 %v775_v47  ;;  %v589_v46 = vand.u32 2147483648, %v2412_v54  ;;  %v773_v57 = vadd.f32 1e-06, %v555_v30 }
 0x188   : > { %v1649_v14 = vpop.eup %1648  ;;  %v688_v0 = vsel %vm686_vm14, %v687_v56, %v685_v9  ;;  %v580_v38 = vsel %vm579_vm15, %v2400_v41, %v578_v34  ;;  %v502_v2 = vpop.xlane.xlu1 %501  ;;  %v2506_v56 = vmul.f32 0.007874016, %v500_v58  ;;  %1664 = vrcp.f32 %v791_v55 }
 0x189   : > { %v1651_v6 = vpop.eup %1650  ;;  %v583_v5 = vsel %vm581_vm0, %v582_v50, %v580_v38  ;;  %v690_v63 = vmul.f32 %v1649_v14, %v2410_v13  ;;  %v472_v48 = vpop.xlane.xlu0 %471  ;;  %v792_v7 = vadd.f32 1e-06, %v688_v0  ;;  %1666 = vrcp.f32 %v776_v16 }
 0x18a   : > { %v585_v26 = vmul.f32 %v1651_v6, %v2412_v54  ;;  %v777_v50 = vadd.f32 1e-06, %v583_v5  ;;  %1668 = vrsqrt.f32 %v2502_v28  ;;  %v2515_v11 = vmul.f32 0.007874016, %v470_v29 }
 0x18b   : > { %v692_v41 = vsel %vm691_vm2, %v2410_v13, %v690_v63  ;;  %v3116_v47 = vand.u32 2147483648, %v2381_v1  ;;  %1670 = vrsqrt.f32 %v2506_v56  ;;  %v701_v29 = vand.u32 2147483648, %v2437_v42 }
 0x18c   : > { %v587_v61 = vsel %vm586_vm4, %v2412_v54, %v585_v26  ;;  %v504_v58 = vpop.xlane.xlu1 %503  ;;  %v1653_v55 = vpop.eup %1652  ;;  %v695_v9 = vsel %vm693_vm3, %v694_v39, %v692_v41  ;;  %1672 = vrcp.f32 %v792_v7  ;;  %vm593_vm8 = vcmp.eq.f32.partialorder %v2458_v31, inf }
 0x18d   : > { %v2521_v34 = vsel %vm665_vm1, %v3116_v47, %v664_v49  ;;  %v697_v30 = vmul.f32 %v1653_v55, %v2437_v42  ;;  %v474_v1 = vpop.xlane.xlu0 %473  ;;  %1674 = vrcp.f32 %v777_v50  ;;  %v590_v49 = vsel %vm588_vm5, %v589_v46, %v587_v61  ;;  %v1655_v38 = vpop.eup %1654 }
 0x18e   : > { %v2533_v13 = vmul.f32 0.007874016, %v502_v2  ;;  %v2535_v39 = vmul.f32 0.007874016, %v472_v48  ;;  %v793_v14 = vadd.f32 1e-06, %v695_v9  ;;  %1676 = vrsqrt.f32 %v2515_v11 }
 0x18f   : > { %v699_v16 = vsel %vm698_vm6, %v2437_v42, %v697_v30  ;;  %v2539_v0 = vmul.f32 0.007874016, %v504_v58  ;;  %vm595_vm9 = vcmp.eq.f32.partialorder %v2458_v31, 0.0  ;;  %v2545_v54 = vmul.f32 0.007874016, %v474_v1  ;;  %v1657_v26 = vpop.eup %1656 }
 0x190   : > { %v702_v6 = vsel %vm700_vm7, %v701_v29, %v699_v16  ;;  %1678 = vrsqrt.f32 %v2533_v13  ;;  %v778_v2 = vadd.f32 1e-06, %v590_v49  ;;  %v592_v5 = vmul.f32 %v1655_v38, %v2458_v31  ;;  %v506_v48 = vpop.xlane.xlu1 %505  ;;  %v2554_v7 = vpop.eup %1658 }
 0x191   : > { %v596_v63 = vand.u32 2147483648, %v2458_v31  ;;  %1680 = vrsqrt.f32 %v2535_v39  ;;  %vm705_vm10 = vcmp.eq.f32.partialorder %v2487_v33, inf  ;;  %vm707_vm11 = vcmp.eq.f32.partialorder %v2487_v33, 0.0  ;;  %v476_v46 = vpop.xlane.xlu0 %475 }
 0x192   : > { %v708_v42 = vand.u32 2147483648, %v2487_v33  ;;  %1682 = vrsqrt.f32 %v2539_v0  ;;  %v794_v41 = vadd.f32 1e-06, %v702_v6  ;;  %v594_v50 = vsel %vm593_vm8, %v2458_v31, %v592_v5 }
 0x193   : > { %1684 = vrcp.f32 %v793_v14  ;;  %vm600_vm12 = vcmp.eq.f32.partialorder %v2502_v28, inf  ;;  %v1661_v61 = vpop.eup %1660  ;;  %vm602_vm13 = vcmp.eq.f32.partialorder %v2502_v28, 0.0  ;;  %v603_v58 = vand.u32 2147483648, %v2502_v28 }
 0x194   : > { %vm712_vm14 = vcmp.eq.f32.partialorder %v2506_v56, inf  ;;  %1686 = vrsqrt.f32 %v2545_v54  ;;  %v2564_v47 = vpop.eup %1662  ;;  %v704_v55 = vmul.f32 %v1661_v61, %v2487_v33  ;;  %vm714_vm15 = vcmp.eq.f32.partialorder %v2506_v56, 0.0  ;;  %v508_v31 = vpop.xlane.xlu1 %507 }
 0x195   : > { %1688 = vrcp.f32 %v778_v2  ;;  %v715_v9 = vand.u32 2147483648, %v2506_v56  ;;  %v2569_v30 = vpop.eup %1664  ;;  %v597_v29 = vsel %vm595_vm9, %v596_v63, %v594_v50  ;;  %vm607_vm0 = vcmp.eq.f32.partialorder %v2515_v11, inf }
 0x196   : > { %1690 = vrcp.f32 %v773_v57  ;;  %v2574_v1 = vmul.f32 0.007874016, %v506_v48  ;;  %v2576_v49 = vmul.f32 0.007874016, %v476_v46  ;;  %v2578_v14 = vpop.eup %1666  ;;  %v706_v16 = vsel %vm705_vm10, %v2487_v33, %v704_v55 }
 0x197   : > { %1692 = vrcp.f32 %v794_v41  ;;  %vm609_vm1 = vcmp.eq.f32.partialorder %v2515_v11, 0.0  ;;  %v610_v38 = vand.u32 2147483648, %v2515_v11  ;;  %vm719_vm2 = vcmp.eq.f32.partialorder %v2533_v13, inf  ;;  %v1669_v6 = vpop.eup %1668 }
 0x198   : > { %vm721_vm3 = vcmp.eq.f32.partialorder %v2533_v13, 0.0  ;;  %v722_v57 = vand.u32 2147483648, %v2533_v13  ;;  %vm614_vm4 = vcmp.eq.f32.partialorder %v2535_v39, inf  ;;  %1694 = vrsqrt.f32 %v2574_v1  ;;  %v1671_v5 = vpop.eup %1670 }
 0x199   : > { %v789_v2 = vadd.f32 1e-06, %v2521_v34  ;;  %v779_v63 = vadd.f32 1e-06, %v597_v29  ;;  %v599_v48 = vmul.f32 %v1669_v6, %v2502_v28  ;;  %v617_v41 = vand.u32 2147483648, %v2535_v39  ;;  %v2594_v50 = vpop.eup %1672 }
 0x19a   : > { %1696 = vrsqrt.f32 %v2576_v49  ;;  %v709_v46 = vsel %vm707_vm11, %v708_v42, %v706_v16  ;;  %v711_v61 = vmul.f32 %v1671_v5, %v2506_v56  ;;  %vm616_vm5 = vcmp.eq.f32.partialorder %v2535_v39, 0.0  ;;  %v2603_v29 = vpop.eup %1674  ;;  %v478_v16 = vpop.xlane.xlu0 %477 }
 0x19b   : > { %v871_v55 = vmul.f32 %v1657_v26, %v2221_v37  ;;  %v2601_v34 = vmul.f32 0.007874016, %v508_v31  ;;  %v601_v6 = vsel %vm600_vm12, %v2502_v28, %v599_v48  ;;  %vm726_vm6 = vcmp.eq.f32.partialorder %v2539_v0, inf  ;;  %v1677_v33 = vpop.eup %1676 }
 0x19c   : > { %v729_v40 = vand.u32 2147483648, %v2539_v0  ;;  %vm621_vm7 = vcmp.eq.f32.partialorder %v2545_v54, inf  ;;  %v604_v42 = vsel %vm602_vm13, %v603_v58, %v601_v6  ;;  %v713_v37 = vsel %vm712_vm14, %v2506_v56, %v711_v61  ;;  %v2625_v58 = vld [vmem:[%s3084_s1] ss:$0 sm:$0xff] }
 0x19d   : > { %vm728_vm8 = vcmp.eq.f32.partialorder %v2539_v0, 0.0  ;;  %vm623_vm9 = vcmp.eq.f32.partialorder %v2545_v54, 0.0  ;;  %v624_v26 = vand.u32 2147483648, %v2545_v54  ;;  %1698 = vrcp.f32 %v789_v2  ;;  %v1679_v31 = vpop.eup %1678 }
 0x19e   : > { %1700 = vrcp.f32 %v779_v63  ;;  %v795_v5 = vadd.f32 1e-06, %v709_v46  ;;  %v716_v48 = vsel %vm714_vm15, %v715_v9, %v713_v37  ;;  %v606_v28 = vmul.f32 %v1677_v33, %v2515_v11  ;;  %v1681_v61 = vpop.eup %1680 }
 0x19f   : > { %v718_v6 = vmul.f32 %v1679_v31, %v2533_v13  ;;  %v736_v27 = vand.u32 2147483648, %v2574_v1  ;;  %v909_v2 = vmul.f32 %v2625_v58, %v871_v55  ;;  %1702 = vrsqrt.f32 %v2601_v34  ;;  %v1683_v63 = vpop.eup %1682 }
 0x1a0   : > { %v780_v46 = vadd.f32 1e-06, %v604_v42  ;;  %v608_v56 = vsel %vm607_vm0, %v2515_v11, %v606_v28  ;;  %v613_v9 = vmul.f32 %v1681_v61, %v2535_v39  ;;  %vm733_vm10 = vcmp.eq.f32.partialorder %v2574_v1, inf  ;;  %v2638_v37 = vpop.eup %1684 }
 0x1a1   : > { %v2636_v33 = vmul.f32 0.007874016, %v478_v16  ;;  %v796_v31 = vadd.f32 1e-06, %v716_v48  ;;  %v611_v55 = vsel %vm609_vm1, %v610_v38, %v608_v56  ;;  %v720_v42 = vsel %vm719_vm2, %v2533_v13, %v718_v6  ;;  %v1687_v28 = vpop.eup %1686  ;;  %v510_v56 = vpop.xlane.xlu1 %509 }
 0x1a2   : > { %v725_v25 = vmul.f32 %v1683_v63, %v2539_v0  ;;  %vm735_vm11 = vcmp.eq.f32.partialorder %v2574_v1, 0.0  ;;  %v781_v61 = vadd.f32 1e-06, %v611_v55  ;;  %v723_v16 = vsel %vm721_vm3, %v722_v57, %v720_v42  ;;  %v2653_v11 = vpop.eup %1688 }
 0x1a3   : > { %v615_v48 = vsel %vm614_vm4, %v2535_v39, %v613_v9  ;;  %1704 = vrsqrt.f32 %v2636_v33  ;;  %v797_v38 = vadd.f32 1e-06, %v723_v16  ;;  %v620_v63 = vmul.f32 %v1687_v28, %v2545_v54  ;;  %v1691_v55 = vpop.eup %1690 }
 0x1a4   : > { %1706 = vrcp.f32 %v795_v5  ;;  %v727_v6 = vsel %vm726_vm6, %v2539_v0, %v725_v25  ;;  %v618_v13 = vsel %vm616_vm5, %v617_v41, %v615_v48  ;;  %vm628_vm12 = vcmp.eq.f32.partialorder %v2576_v49, inf  ;;  %v2663_v57 = vpop.eup %1692 }
 0x1a5   : > { %1708 = vrcp.f32 %v780_v46  ;;  %vm630_vm13 = vcmp.eq.f32.partialorder %v2576_v49, 0.0  ;;  %v622_v5 = vsel %vm621_vm7, %v2545_v54, %v620_v63  ;;  %v870_v25 = vmul.f32 %v1691_v55, %v2218_v36  ;;  %v2672_v46 = vld [vmem:[%s3085_s2] ss:$0 sm:$0xff]  ;;  %v1695_v41 = vpop.eup %1694  ;;  %v512_v55 = vpop.xlane.xlu1 %511 }
 0x1a6   : > { %1710 = vrcp.f32 %v796_v31  ;;  %v631_v39 = vand.u32 2147483648, %v2576_v49  ;;  %v730_v9 = vsel %vm728_vm8, %v729_v40, %v727_v6  ;;  %v625_v31 = vsel %vm623_vm9, %v624_v26, %v622_v5  ;;  %v480_v26 = vpop.xlane.xlu0 %479 }
 0x1a7   : > { %1712 = vrcp.f32 %v781_v61  ;;  %v948_v42 = vadd.f32 %v2672_v46, %v909_v2  ;;  %vm740_vm14 = vcmp.eq.f32.partialorder %v2601_v34, inf  ;;  %v1697_v36 = vpop.eup %1696  ;;  %v782_v28 = vadd.f32 1e-06, %v618_v13 }
 0x1a8   : > { %1714 = vrcp.f32 %v797_v38  ;;  %v908_v16 = vmul.f32 %v2625_v58, %v870_v25  ;;  %v732_v48 = vmul.f32 %v1695_v41, %v2574_v1  ;;  %v627_v63 = vmul.f32 %v1697_v36, %v2576_v49 }
 0x1a9   : > { %vm742_vm15 = vcmp.eq.f32.partialorder %v2601_v34, 0.0  ;;  %v872_v40 = vmul.f32 %v2564_v47, %v2236_v51  ;;  %v887_v0 = vmul.f32 %v2554_v7, %v2229_v44  ;;  %v2689_v54 = vmul.f32 0.007874016, %v510_v56 }
 0x1aa   : > { %v798_v2 = vadd.f32 1e-06, %v730_v9  ;;  %v783_v61 = vadd.f32 1e-06, %v625_v31  ;;  %v947_v38 = vadd.f32 %v2672_v46, %v908_v16  ;;  %v734_v6 = vsel %vm733_vm10, %v2574_v1, %v732_v48  ;;  %v1699_v13 = vpop.eup %1698 }
 0x1ab   : > { %v737_v5 = vsel %vm735_vm11, %v736_v27, %v734_v6  ;;  %v629_v44 = vsel %vm628_vm12, %v2576_v49, %v627_v63  ;;  %v910_v51 = vmul.f32 %v2625_v58, %v872_v40  ;;  %v925_v7 = vmul.f32 %v2625_v58, %v887_v0  ;;  %v2702_v47 = vpop.eup %1700  ;;  %v482_v49 = vpop.xlane.xlu0 %481 }
 0x1ac   : > { %1489 = vmatprep.mubr.f32.mxu0 %v947_v38  ;;  %v886_v56 = vmul.f32 %v1699_v13, %v2226_v43  ;;  %v743_v25 = vand.u32 2147483648, %v2601_v34  ;;  %1716 = vrsqrt.f32 %v2689_v54  ;;  %v2707_v41 = vmul.f32 0.007874016, %v480_v26  ;;  %v1703_v27 = vpop.eup %1702  ;;  %v514_v40 = vpop.xlane.xlu1 %513 }
 0x1ad   : > { %1718 = vrcp.f32 %v782_v28  ;;  %v799_v1 = vadd.f32 1e-06, %v737_v5  ;;  %v632_v9 = vsel %vm630_vm13, %v631_v39, %v629_v44  ;;  %1490 = vmatmul.mubr.f32.vlgmr.msra.gmra.mxu0 %v948_v42  ;;  %v949_v31 = vadd.f32 %v2672_v46, %v910_v51 }
 0x1ae   : > { %1720 = vrcp.f32 %v798_v2  ;;  %v924_v36 = vmul.f32 %v2625_v58, %v886_v56  ;;  %v739_v43 = vmul.f32 %v1703_v27, %v2601_v34  ;;  %vm635_vm0 = vcmp.eq.f32.partialorder %v2636_v33, inf }
 0x1af   : > { %1722 = vrcp.f32 %v783_v61  ;;  %vm637_vm1 = vcmp.eq.f32.partialorder %v2636_v33, 0.0  ;;  %v638_v16 = vand.u32 2147483648, %v2636_v33  ;;  %1492 = vmatprep.mubr.f32.mxu0 %v949_v31  ;;  %v964_v28 = vadd.f32 %v2672_v46, %v925_v7 }
 0x1b0   : > { %v1705_v39 = vpop.eup %1704  ;;  %v784_v42 = vadd.f32 1e-06, %v632_v9  ;;  %v963_v48 = vadd.f32 %v2672_v46, %v924_v36  ;;  %v741_v63 = vsel %vm740_vm14, %v2601_v34, %v739_v43  ;;  %1724 = vrsqrt.f32 %v2707_v41 }
 0x1b1   : > { %v2723_v0 = vpop.eup %1706  ;;  %1726 = vrcp.f32 %v799_v1  ;;  %v634_v26 = vmul.f32 %v1705_v39, %v2636_v33  ;;  %v873_v2 = vmul.f32 %v2578_v14, %v2246_v59  ;;  %v888_v61 = vmul.f32 %v2569_v30, %v2239_v52 }
 0x1b2   : > { %v2730_v38 = vpop.eup %1708  ;;  %1513 = vmatprep.mubr.f32.mxu1 %v963_v48  ;;  %v744_v6 = vsel %vm742_vm15, %v743_v25, %v741_v63  ;;  %v2734_v13 = vmul.f32 0.007874016, %v512_v55  ;;  %v2736_v5 = vmul.f32 0.007874016, %v482_v49  ;;  %v874_v44 = vmul.f32 %v2603_v29, %v2256_v3  ;;  %v484_v25 = vpop.xlane.xlu0 %483 }
 0x1b3   : > { %v2740_v51 = vpop.eup %1710  ;;  %v636_v59 = vsel %vm635_vm0, %v2636_v33, %v634_v26  ;;  %1514 = vmatmul.mubr.f32.vlgmr.msra.gmra.mxu1 %v964_v28  ;;  %v911_v52 = vmul.f32 %v2625_v58, %v873_v2  ;;  %v926_v30 = vmul.f32 %v2625_v58, %v888_v61  ;;  %v889_v14 = vmul.f32 %v2594_v50, %v2249_v60  ;;  %v516_v60 = vpop.xlane.xlu1 %515 }
 0x1b4   : > { %v2749_v34 = vpop.eup %1712  ;;  %1728 = vrcp.f32 %v784_v42  ;;  %v639_v3 = vsel %vm637_vm1, %v638_v16, %v636_v59  ;;  %v800_v55 = vadd.f32 1e-06, %v744_v6  ;;  %vm747_vm2 = vcmp.eq.f32.partialorder %v2689_v54, inf }
 0x1b5   : > { %v2753_v29 = vpop.eup %1714  ;;  %v950_v7 = vadd.f32 %v2672_v46, %v911_v52  ;;  %v965_v56 = vadd.f32 %v2672_v46, %v926_v30  ;;  %1730 = vrsqrt.f32 %v2734_v13  ;;  %vm749_vm3 = vcmp.eq.f32.partialorder %v2689_v54, 0.0 }
 0x1b6   : > { %1732 = vrsqrt.f32 %v2736_v5  ;;  %v785_v50 = vadd.f32 1e-06, %v639_v3  ;;  %v750_v33 = vand.u32 2147483648, %v2689_v54  ;;  %v912_v27 = vmul.f32 %v2625_v58, %v874_v44 }
 0x1b7   : > { %1493 = vmatmul.mubr.f32.gmra.mxu0 %v950_v7  ;;  %1516 = vmatprep.mubr.f32.mxu1 %v965_v56  ;;  %v927_v1 = vmul.f32 %v2625_v58, %v889_v14  ;;  %v2764_v9 = vmul.f32 0.007874016, %v514_v40  ;;  %v2766_v31 = vmul.f32 0.007874016, %v484_v25  ;;  %v875_v36 = vmul.f32 %v2653_v11, %v2266_v35 }
 0x1b8   : > { %v890_v43 = vmul.f32 %v2638_v37, %v2259_v4  ;;  %1734 = vrcp.f32 %v800_v55  ;;  %v951_v28 = vadd.f32 %v2672_v46, %v912_v27  ;;  %v2774_v39 = vmul.f32 0.007874016, %v516_v60 }
 0x1b9   : > { %v1717_v16 = vpop.eup %1716  ;;  %v966_v49 = vadd.f32 %v2672_v46, %v927_v1  ;;  %vm642_vm4 = vcmp.eq.f32.partialorder %v2707_v41, inf  ;;  %vm644_vm5 = vcmp.eq.f32.partialorder %v2707_v41, 0.0  ;;  %1736 = vrsqrt.f32 %v2764_v9 }
 0x1ba   : > { %v1719_v42 = vpop.eup %1718  ;;  %v746_v48 = vmul.f32 %v1717_v16, %v2689_v54  ;;  %v645_v4 = vand.u32 2147483648, %v2707_v41  ;;  %v757_v37 = vand.u32 2147483648, %v2734_v13  ;;  %1495 = vmatprep.mubr.f32.mxu0 %v951_v28  ;;  %1738 = vrsqrt.f32 %v2766_v31 }
 0x1bb   : > { %v2780_v35 = vpop.eup %1720  ;;  %1517 = vmatmul.mubr.f32.gmra.mxu1 %v966_v49  ;;  %v876_v11 = vmul.f32 %v2702_v47, %v2276_v45  ;;  %1740 = vrcp.f32 %v785_v50  ;;  %vm754_vm6 = vcmp.eq.f32.partialorder %v2734_v13, inf  ;;  %v913_v26 = vmul.f32 %v2625_v58, %v875_v36 }
 0x1bc   : > { %v2787_v63 = vpop.eup %1722  ;;  %v748_v40 = vsel %vm747_vm2, %v2689_v54, %v746_v48  ;;  %v928_v2 = vmul.f32 %v2625_v58, %v890_v43  ;;  %vm756_vm7 = vcmp.eq.f32.partialorder %v2734_v13, 0.0  ;;  %vm649_vm8 = vcmp.eq.f32.partialorder %v2736_v5, inf }
 0x1bd   : > { %v1725_v61 = vpop.eup %1724  ;;  %v751_v6 = vsel %vm749_vm3, %v750_v33, %v748_v40  ;;  %v652_v45 = vand.u32 2147483648, %v2736_v5  ;;  %v764_v47 = vand.u32 2147483648, %v2764_v9  ;;  %1742 = vrsqrt.f32 %v2774_v39 }
 0x1be   : > { %v2802_v44 = vpop.eup %1726  ;;  %v801_v59 = vadd.f32 1e-06, %v751_v6  ;;  %v641_v52 = vmul.f32 %v1725_v61, %v2707_v41  ;;  %vm651_vm9 = vcmp.eq.f32.partialorder %v2736_v5, 0.0  ;;  %v952_v54 = vadd.f32 %v2672_v46, %v913_v26 }
 0x1bf   : > { %v967_v30 = vadd.f32 %v2672_v46, %v928_v2  ;;  %v659_v14 = vand.u32 2147483648, %v2766_v31  ;;  %v914_v3 = vmul.f32 %v2625_v58, %v876_v11  ;;  %v891_v55 = vmul.f32 %v2663_v57, %v2269_v8 }
 0x1c0   : > { %v877_v7 = vmul.f32 %v2730_v38, %v2286_v53  ;;  %1744 = vrcp.f32 %v801_v59  ;;  %v643_v56 = vsel %vm642_vm4, %v2707_v41, %v641_v52  ;;  %1496 = vmatmul.mubr.f32.gmra.mxu0 %v952_v54  ;;  %v892_v25 = vmul.f32 %v2723_v0, %v2279_v10 }
 0x1c1   : > { %1519 = vmatprep.mubr.f32.mxu1 %v967_v30  ;;  %v878_v60 = vmul.f32 %v2749_v34, %v2296_v15  ;;  %v1729_v50 = vpop.eup %1728  ;;  %v646_v8 = vsel %vm644_vm5, %v645_v4, %v643_v56  ;;  %vm761_vm10 = vcmp.eq.f32.partialorder %v2764_v9, inf  ;;  %v953_v53 = vadd.f32 %v2672_v46, %v914_v3 }
 0x1c2   : > { %v929_v57 = vmul.f32 %v2625_v58, %v891_v55  ;;  %v915_v38 = vmul.f32 %v2625_v58, %v877_v7  ;;  %v1731_v33 = vpop.eup %1730  ;;  %v786_v27 = vadd.f32 1e-06, %v646_v8  ;;  %vm763_vm11 = vcmp.eq.f32.partialorder %v2764_v9, 0.0 }
 0x1c3   : > { %vm656_vm12 = vcmp.eq.f32.partialorder %v2766_v31, inf  ;;  %v930_v10 = vmul.f32 %v2625_v58, %v892_v25  ;;  %v916_v15 = vmul.f32 %v2625_v58, %v878_v60  ;;  %v893_v41 = vmul.f32 %v2740_v51, %v2289_v12  ;;  %v1733_v0 = vpop.eup %1732  ;;  %1498 = vmatprep.mubr.f32.mxu0 %v953_v53 }
 0x1c4   : > { %v753_v34 = vmul.f32 %v1731_v33, %v2734_v13  ;;  %vm658_vm13 = vcmp.eq.f32.partialorder %v2766_v31, 0.0  ;;  %v968_v1 = vadd.f32 %v2672_v46, %v929_v57  ;;  %v954_v36 = vadd.f32 %v2672_v46, %v915_v38 }
 0x1c5   : > { %v879_v43 = vmul.f32 %v1719_v42, %v2306_v17  ;;  %1746 = vrcp.f32 %v786_v27  ;;  %v648_v16 = vmul.f32 %v1733_v0, %v2736_v5  ;;  %vm768_vm14 = vcmp.eq.f32.partialorder %v2774_v39, inf  ;;  %v1735_v42 = vpop.eup %1734 }
 0x1c6   : > { %v969_v28 = vadd.f32 %v2672_v46, %v930_v10  ;;  %v955_v12 = vadd.f32 %v2672_v46, %v916_v15  ;;  %v755_v51 = vsel %vm754_vm6, %v2734_v13, %v753_v34  ;;  %vm770_vm15 = vcmp.eq.f32.partialorder %v2774_v39, 0.0  ;;  %1520 = vmatmul.mubr.f32.gmra.mxu1 %v968_v1  ;;  %1499 = vmatmul.mubr.f32.gmra.mxu0 %v954_v36  ;;  %v1737_v26 = vpop.eup %1736 }
 0x1c7   : > { %v931_v49 = vmul.f32 %v2625_v58, %v893_v41  ;;  %v917_v17 = vmul.f32 %v2625_v58, %v879_v43  ;;  %v758_v48 = vsel %vm756_vm7, %v757_v37, %v755_v51  ;;  %v650_v4 = vsel %vm649_vm8, %v2736_v5, %v648_v16  ;;  %v1739_v37 = vpop.eup %1738 }
 0x1c8   : > { %v771_v11 = vand.u32 2147483648, %v2774_v39  ;;  %1522 = vmatprep.mubr.f32.mxu1 %v969_v28  ;;  %1501 = vmatprep.mubr.f32.mxu0 %v955_v12  ;;  %v894_v40 = vmul.f32 %v2753_v29, %v2299_v62  ;;  %v802_v2 = vadd.f32 1e-06, %v758_v48  ;;  %v653_v61 = vsel %vm651_vm9, %v652_v45, %v650_v4  ;;  %v1741_v3 = vpop.eup %1740  ;;  %v3117_v28 = vld [vmem:[#allocation11_spill] sm:$0xff] }
 0x1c9   : > { %v970_v6 = vadd.f32 %v2672_v46, %v931_v49  ;;  %v956_v13 = vadd.f32 %v2672_v46, %v917_v17  ;;  %v787_v59 = vadd.f32 1e-06, %v653_v61  ;;  %v760_v52 = vmul.f32 %v1737_v26, %v2764_v9 }
 0x1ca   : > { %v932_v54 = vmul.f32 %v2625_v58, %v894_v40  ;;  %v880_v30 = vmul.f32 %v2787_v63, %v2316_v18  ;;  %1748 = vrcp.f32 %v802_v2  ;;  %v655_v62 = vmul.f32 %v1739_v37, %v2766_v31  ;;  %v1743_v45 = vpop.eup %1742  ;;  %v3119_v40 = vld [vmem:[#allocation13_spill] sm:$0xff]  ;;  %v3120_v2 = vld [vmem:[#allocation14_spill] sm:$0xff] }
 0x1cb   : > { %1523 = vmatmul.mubr.f32.gmra.mxu1 %v970_v6  ;;  %1502 = vmatmul.mubr.f32.gmra.mxu0 %v956_v13  ;;  %v895_v5 = vmul.f32 %v2780_v35, %v2309_v32  ;;  %v881_v29 = vmul.f32 %v1729_v50, %v2326_v20  ;;  %1750 = vrcp.f32 %v787_v59  ;;  %v762_v55 = vsel %vm761_vm10, %v2764_v9, %v760_v52  ;;  %v3121_v59 = vld [vmem:[#allocation15_spill] sm:$0xff] }
 0x1cc   : > { %v971_v7 = vadd.f32 %v2672_v46, %v932_v54  ;;  %v918_v18 = vmul.f32 %v2625_v58, %v880_v30  ;;  %v765_v63 = vsel %vm763_vm11, %v764_v47, %v762_v55  ;;  %v657_v32 = vsel %vm656_vm12, %v2766_v31, %v655_v62 }
 0x1cd   : > { %v767_v20 = vmul.f32 %v1743_v45, %v2774_v39  ;;  %v933_v35 = vmul.f32 %v2625_v58, %v895_v5  ;;  %v803_v56 = vadd.f32 1e-06, %v765_v63  ;;  %v660_v25 = vsel %vm658_vm13, %v659_v14, %v657_v32  ;;  %v1745_v47 = vpop.eup %1744  ;;  %v2931_v5 = vld [vmem:[%s3087_s4] ss:$0 sm:$0xff] }
 0x1ce   : > { %1525 = vmatprep.mubr.f32.mxu1 %v971_v7  ;;  %v957_v60 = vadd.f32 %v2672_v46, %v918_v18  ;;  %v919_v9 = vmul.f32 %v2625_v58, %v881_v29  ;;  %v788_v50 = vadd.f32 1e-06, %v660_v25  ;;  %v896_v57 = vmul.f32 %v2802_v44, %v2319_v19  ;;  %v1758_v7 = vld [vmem:[%s2079_s7 + $0x8] sm:$0xff] }
 0x1cf   : > { %v769_v8 = vsel %vm768_vm14, %v2774_v39, %v767_v20  ;;  %v972_v53 = vadd.f32 %v2672_v46, %v933_v35  ;;  %1752 = vrcp.f32 %v803_v56  ;;  %v882_v38 = vmul.f32 %v1741_v3, %v2336_v22  ;;  %v1760_v56 = vld [vmem:[%s2079_s7 + $0x88] sm:$0xff] }
 0x1d0   : > { %v772_v31 = vsel %vm770_vm15, %v771_v11, %v769_v8  ;;  %1504 = vmatprep.mubr.f32.mxu0 %v957_v60  ;;  %v958_v14 = vadd.f32 %v2672_v46, %v919_v9  ;;  %1754 = vrcp.f32 %v788_v50  ;;  %v934_v27 = vmul.f32 %v2625_v58, %v896_v57  ;;  %v1762_v57 = vld [vmem:[%s2079_s7 + $0x18] sm:$0xff] }
 0x1d1   : > { %v804_v33 = vadd.f32 1e-06, %v772_v31  ;;  %1526 = vmatmul.mubr.f32.gmra.mxu1 %v972_v53  ;;  %v897_v10 = vmul.f32 %v1735_v42, %v2329_v21  ;;  %v920_v15 = vmul.f32 %v2625_v58, %v882_v38  ;;  %v898_v19 = vmul.f32 %v1745_v47, %v2339_v23  ;;  %v1761_v47 = vld [vmem:[%s2079_s7 + $0x80] sm:$0xff] }
 0x1d2   : > { %1505 = vmatmul.mubr.f32.gmra.mxu0 %v958_v14  ;;  %v1747_v44 = vpop.eup %1746  ;;  %v973_v39 = vadd.f32 %v2672_v46, %v934_v27 }
 0x1d3   : > { %1756 = vrcp.f32 %v804_v33  ;;  %v935_v41 = vmul.f32 %v2625_v58, %v897_v10  ;;  %v959_v22 = vadd.f32 %v2672_v46, %v920_v15  ;;  %v883_v0 = vmul.f32 %v1747_v44, %v2346_v24  ;;  %v3118_v24 = vld [vmem:[#allocation12_spill] sm:$0xff]  ;;  %v1763_v33 = vld [vmem:[%s2079_s7 + $0x10] sm:$0xff] }
 0x1d4   : > { %v936_v34 = vmul.f32 %v2625_v58, %v898_v19  ;;  %1528 = vmatprep.mubr.f32.mxu1 %v973_v39  ;;  %v1764_v19 = vld [vmem:[%s2079_s7 + $0x98] sm:$0xff] }
 0x1d5   : > { %v974_v21 = vadd.f32 %v2672_v46, %v935_v41  ;;  %1507 = vmatprep.mubr.f32.mxu0 %v959_v22  ;;  %v921_v1 = vmul.f32 %v2625_v58, %v883_v0  ;;  %v1765_v41 = vld [vmem:[%s2079_s7 + $0x90] sm:$0xff] }
 0x1d6   : > { %v975_v23 = vadd.f32 %v2672_v46, %v936_v34 }
 0x1d7   : > { %1529 = vmatmul.mubr.f32.gmra.mxu1 %v974_v21  ;;  %v1749_v36 = vpop.eup %1748  ;;  %v960_v43 = vadd.f32 %v2672_v46, %v921_v1  ;;  %v1766_v1 = vld [vmem:[%s2079_s7 + $0x28] sm:$0xff] }
 0x1d8   : > { %1531 = vmatprep.mubr.f32.mxu1 %v975_v23  ;;  %v1751_v16 = vpop.eup %1750  ;;  %v899_v12 = vmul.f32 %v1749_v36, %v3117_v28 }
 0x1d9   : > { %1508 = vmatmul.mubr.f32.gmra.mxu0 %v960_v43  ;;  %v884_v51 = vmul.f32 %v1751_v16, %v3118_v24  ;;  %v1767_v43 = vld [vmem:[%s2079_s7 + $0x20] sm:$0xff] }
 0x1da   : > { %v937_v49 = vmul.f32 %v2625_v58, %v899_v12 }
 0x1db   : > { %v922_v17 = vmul.f32 %v2625_v58, %v884_v51 }
 0x1dc   : > { %v1753_v42 = vpop.eup %1752  ;;  %v976_v48 = vadd.f32 %v2672_v46, %v937_v49 }
 0x1dd   : > { %v1755_v4 = vpop.eup %1754  ;;  %v961_v11 = vadd.f32 %v2672_v46, %v922_v17  ;;  %v900_v26 = vmul.f32 %v1753_v42, %v3119_v40  ;;  %v1768_v42 = vld [vmem:[%s2079_s7 + $0xa8] sm:$0xff] }
 0x1de   : > { %1532 = vmatmul.mubr.f32.gmra.mxu1 %v976_v48  ;;  %v885_v61 = vmul.f32 %v1755_v4, %v3120_v2 }
 0x1df   : > { %1510 = vmatprep.mubr.f32.mxu0 %v961_v11  ;;  %v938_v13 = vmul.f32 %v2625_v58, %v900_v26  ;;  %v1769_v11 = vld [vmem:[%s2079_s7 + $0x38] sm:$0xff] }
 0x1e0   : > { %v1757_v6 = vpop.eup %1756  ;;  %v923_v37 = vmul.f32 %v2625_v58, %v885_v61 }
 0x1e1   : > { %v901_v52 = vmul.f32 %v1757_v6, %v3121_v59  ;;  %v977_v54 = vadd.f32 %v2672_v46, %v938_v13  ;;  %v1770_v6 = vld [vmem:[%s2079_s7 + $0xa0] sm:$0xff] }
 0x1e2   : > { %v962_v30 = vadd.f32 %v2672_v46, %v923_v37  ;;  %v1771_v37 = vld [vmem:[%s2079_s7 + $0x30] sm:$0xff] }
 0x1e3   : > { %v939_v3 = vmul.f32 %v2625_v58, %v901_v52  ;;  %1534 = vmatprep.mubr.f32.mxu1 %v977_v54 }
 0x1e4   : > { %1511 = vmatmul.mubr.f32.gmra.mxu0 %v962_v30 }
 0x1e5   : > { %v978_v62 = vadd.f32 %v2672_v46, %v939_v3  ;;  %v1759_v46 = vld [vmem:[%s2079_s7] sm:$0xff] }
 0x1e7   : > { %1535 = vmatmul.mubr.f32.gmra.mxu1 %v978_v62  ;;  %v1772_v62 = vld [vmem:[%s2079_s7 + $0xb8] sm:$0xff] }
 0x26d   : > { %v1491_v29 = vpop.f32.mrf.mxu0 }
 0x26e   : > { %v1074_v45 = vadd.f32 %v1491_v29, %v2931_v5 }
 0x26f   : > { %v1068_v55 = vpop.f32.mrf.mxu0 }
 0x270   : > { %v1228_v18 = vadd.f32 %v1758_v7, %v1074_v45  ;;  %v1069_v58 = vadd.f32 %v2931_v5, %v1068_v55  ;;  %v1773_v55 = vld [vmem:[%s2079_s7 + $0x48] sm:$0xff] }
 0x272   : > { %1260 = vst [vmem:[%s2938_s23 + $0x8] sm:$0xff] %v1228_v18  ;;  %v1227_v63 = vadd.f32 %v1759_v46, %v1069_v58  ;;  %v1774_v58 = vld [vmem:[%s2079_s7 + $0xb0] sm:$0xff] }
 0x273   : > { %v1515_v32 = vpop.f32.mrf.mxu1 }
 0x274   : > { %1259 = vst [vmem:[%s2938_s23] sm:$0xff] %v1227_v63  ;;  %v1154_v20 = vadd.f32 %v1515_v32, %v2931_v5  ;;  %v1775_v63 = vld [vmem:[%s2079_s7 + $0x40] sm:$0xff] }
 0x275   : > { %v1148_v35 = vpop.f32.mrf.mxu1 }
 0x276   : > { %v1244_v25 = vadd.f32 %v1760_v56, %v1154_v20  ;;  %v1149_v60 = vadd.f32 %v2931_v5, %v1148_v35 }
 0x277   : > { %v1494_v9 = vpop.f32.mrf.mxu0 }
 0x278   : > { %1276 = vst [vmem:[%s2938_s23 + $0x88] sm:$0xff] %v1244_v25  ;;  %v1243_v50 = vadd.f32 %v1761_v47, %v1149_v60  ;;  %v1084_v8 = vadd.f32 %v1494_v9, %v2931_v5  ;;  %v1776_v9 = vld [vmem:[%s2079_s7 + $0xc8] sm:$0xff] }
 0x279   : > { %v1078_v53 = vpop.f32.mrf.mxu0 }
 0x27a   : > { %1275 = vst [vmem:[%s2938_s23 + $0x80] sm:$0xff] %v1243_v50  ;;  %v1230_v31 = vadd.f32 %v1762_v57, %v1084_v8  ;;  %v1079_v14 = vadd.f32 %v2931_v5, %v1078_v53  ;;  %v1777_v53 = vld [vmem:[%s2079_s7 + $0x58] sm:$0xff] }
 0x27b   : > { %v1518_v38 = vpop.f32.mrf.mxu1 }
 0x27c   : > { %1262 = vst [vmem:[%s2938_s23 + $0x18] sm:$0xff] %v1230_v31  ;;  %v1229_v27 = vadd.f32 %v1763_v33, %v1079_v14  ;;  %v1164_v10 = vadd.f32 %v1518_v38, %v2931_v5  ;;  %v1778_v14 = vld [vmem:[%s2079_s7 + $0xc0] sm:$0xff]  ;;  %v1779_v33 = vld [vmem:[%s2079_s7 + $0x50] sm:$0xff] }
 0x27d   : > { %v1158_v15 = vpop.f32.mrf.mxu1 }
 0x27e   : > { %1261 = vst [vmem:[%s2938_s23 + $0x10] sm:$0xff] %v1229_v27  ;;  %v1246_v44 = vadd.f32 %v1764_v19, %v1164_v10  ;;  %v1159_v39 = vadd.f32 %v2931_v5, %v1158_v15 }
 0x280   : > { %1278 = vst [vmem:[%s2938_s23 + $0x98] sm:$0xff] %v1246_v44  ;;  %v1245_v22 = vadd.f32 %v1765_v41, %v1159_v39  ;;  %v1497_v0 = vpop.f32.mrf.mxu0  ;;  %v1780_v44 = vld [vmem:[%s2079_s7 + $0xd8] sm:$0xff] }
 0x281   : > { %v1094_v34 = vadd.f32 %v1497_v0, %v2931_v5 }
 0x282   : > { %1277 = vst [vmem:[%s2938_s23 + $0x90] sm:$0xff] %v1245_v22  ;;  %v1088_v21 = vpop.f32.mrf.mxu0 }
 0x283   : > { %v1232_v23 = vadd.f32 %v1766_v1, %v1094_v34  ;;  %v1089_v36 = vadd.f32 %v2931_v5, %v1088_v21  ;;  %v1781_v34 = vld [vmem:[%s2079_s7 + $0xd0] sm:$0xff] }
 0x285   : > { %1264 = vst [vmem:[%s2938_s23 + $0x28] sm:$0xff] %v1232_v23  ;;  %v1231_v16 = vadd.f32 %v1767_v43, %v1089_v36  ;;  %v1782_v23 = vld [vmem:[%s2079_s7 + $0x68] sm:$0xff] }
 0x286   : > { %v1521_v28 = vpop.f32.mrf.mxu1  ;;  %v1500_v12 = vpop.f32.mrf.mxu0 }
 0x287   : > { %v1174_v24 = vadd.f32 %v1521_v28, %v2931_v5  ;;  %v1104_v51 = vadd.f32 %v1500_v12, %v2931_v5  ;;  %1263 = vst [vmem:[%s2938_s23 + $0x20] sm:$0xff] %v1231_v16  ;;  %v1783_v16 = vld [vmem:[%s2079_s7 + $0x60] sm:$0xff] }
 0x288   : > { %v1168_v49 = vpop.f32.mrf.mxu1  ;;  %v1098_v17 = vpop.f32.mrf.mxu0 }
 0x289   : > { %v1248_v48 = vadd.f32 %v1768_v42, %v1174_v24  ;;  %v1169_v4 = vadd.f32 %v2931_v5, %v1168_v49  ;;  %v1234_v40 = vadd.f32 %v1769_v11, %v1104_v51  ;;  %v1099_v26 = vadd.f32 %v2931_v5, %v1098_v17  ;;  %v1784_v49 = vld [vmem:[%s2079_s7 + $0xe8] sm:$0xff] }
 0x28b   : > { %v1524_v2 = vpop.f32.mrf.mxu1  ;;  %v1503_v61 = vpop.f32.mrf.mxu0  ;;  %1280 = vst [vmem:[%s2938_s23 + $0xa8] sm:$0xff] %v1248_v48  ;;  %v1247_v13 = vadd.f32 %v1770_v6, %v1169_v4  ;;  %1266 = vst [vmem:[%s2938_s23 + $0x38] sm:$0xff] %v1234_v40  ;;  %v1233_v59 = vadd.f32 %v1771_v37, %v1099_v26  ;;  %v1785_v48 = vld [vmem:[%s2079_s7 + $0xe0] sm:$0xff] }
 0x28c   : > { %v1184_v52 = vadd.f32 %v1524_v2, %v2931_v5  ;;  %v1114_v54 = vadd.f32 %v1503_v61, %v2931_v5  ;;  %v1786_v61 = vld [vmem:[%s2079_s7 + $0x78] sm:$0xff] }
 0x28d   : > { %v1178_v30 = vpop.f32.mrf.mxu1  ;;  %v1108_v3 = vpop.f32.mrf.mxu0  ;;  %1279 = vst [vmem:[%s2938_s23 + $0xa0] sm:$0xff] %v1247_v13  ;;  %1265 = vst [vmem:[%s2938_s23 + $0x30] sm:$0xff] %v1233_v59 }
 0x28e   : > { %v1250_v29 = vadd.f32 %v1772_v62, %v1184_v52  ;;  %v1179_v45 = vadd.f32 %v2931_v5, %v1178_v30  ;;  %v1236_v7 = vadd.f32 %v1773_v55, %v1114_v54  ;;  %v1109_v18 = vadd.f32 %v2931_v5, %v1108_v3  ;;  %v1787_v52 = vld [vmem:[%s2079_s7 + $0x70] sm:$0xff]  ;;  %v1788_v30 = vld [vmem:[%s2079_s7 + $0xf8] sm:$0xff] }
 0x290   : > { %1282 = vst [vmem:[%s2938_s23 + $0xb8] sm:$0xff] %v1250_v29  ;;  %v1249_v46 = vadd.f32 %v1774_v58, %v1179_v45  ;;  %1268 = vst [vmem:[%s2938_s23 + $0x48] sm:$0xff] %v1236_v7  ;;  %v1235_v32 = vadd.f32 %v1775_v63, %v1109_v18  ;;  %v1789_v29 = vld [vmem:[%s2079_s7 + $0xf0] sm:$0xff] }
 0x291   : > { %v1527_v20 = vpop.f32.mrf.mxu1 }
 0x292   : > { %1281 = vst [vmem:[%s2938_s23 + $0xb0] sm:$0xff] %v1249_v46  ;;  %1267 = vst [vmem:[%s2938_s23 + $0x40] sm:$0xff] %v1235_v32  ;;  %v1194_v35 = vadd.f32 %v1527_v20, %v2931_v5  ;;  %v1506_v56 = vpop.f32.mrf.mxu0 }
 0x293   : > { %v1188_v25 = vpop.f32.mrf.mxu1  ;;  %v1124_v60 = vadd.f32 %v1506_v56, %v2931_v5 }
 0x294   : > { %v1252_v47 = vadd.f32 %v1776_v9, %v1194_v35  ;;  %v1189_v50 = vadd.f32 %v2931_v5, %v1188_v25  ;;  %v1118_v8 = vpop.f32.mrf.mxu0 }
 0x295   : > { %v1238_v57 = vadd.f32 %v1777_v53, %v1124_v60  ;;  %v1119_v31 = vadd.f32 %v2931_v5, %v1118_v8 }
 0x296   : > { %1284 = vst [vmem:[%s2938_s23 + $0xc8] sm:$0xff] %v1252_v47  ;;  %v1251_v38 = vadd.f32 %v1778_v14, %v1189_v50 }
 0x297   : > { %1270 = vst [vmem:[%s2938_s23 + $0x58] sm:$0xff] %v1238_v57  ;;  %v1237_v27 = vadd.f32 %v1779_v33, %v1119_v31  ;;  %v1530_v10 = vpop.f32.mrf.mxu1 }
 0x298   : > { %1283 = vst [vmem:[%s2938_s23 + $0xc0] sm:$0xff] %v1251_v38  ;;  %v1204_v15 = vadd.f32 %v1530_v10, %v2931_v5 }
 0x299   : > { %1269 = vst [vmem:[%s2938_s23 + $0x50] sm:$0xff] %v1237_v27  ;;  %v1198_v19 = vpop.f32.mrf.mxu1  ;;  %v1509_v22 = vpop.f32.mrf.mxu0 }
 0x29a   : > { %v1254_v39 = vadd.f32 %v1780_v44, %v1204_v15  ;;  %v1199_v41 = vadd.f32 %v2931_v5, %v1198_v19  ;;  %v1134_v0 = vadd.f32 %v1509_v22, %v2931_v5 }
 0x29b   : > { %v1128_v1 = vpop.f32.mrf.mxu0 }
 0x29c   : > { %1286 = vst [vmem:[%s2938_s23 + $0xd8] sm:$0xff] %v1254_v39  ;;  %v1253_v21 = vadd.f32 %v1781_v34, %v1199_v41  ;;  %v1240_v36 = vadd.f32 %v1782_v23, %v1134_v0  ;;  %v1129_v43 = vadd.f32 %v2931_v5, %v1128_v1 }
 0x29e   : > { %1285 = vst [vmem:[%s2938_s23 + $0xd0] sm:$0xff] %v1253_v21  ;;  %1272 = vst [vmem:[%s2938_s23 + $0x68] sm:$0xff] %v1240_v36  ;;  %v1239_v28 = vadd.f32 %v1783_v16, %v1129_v43  ;;  %v1533_v12 = vpop.f32.mrf.mxu1 }
 0x29f   : > { %v1214_v24 = vadd.f32 %v1533_v12, %v2931_v5 }
 0x2a0   : > { %1271 = vst [vmem:[%s2938_s23 + $0x60] sm:$0xff] %v1239_v28  ;;  %v1208_v51 = vpop.f32.mrf.mxu1 }
 0x2a1   : > { %v1256_v17 = vadd.f32 %v1784_v49, %v1214_v24  ;;  %v1209_v42 = vadd.f32 %v2931_v5, %v1208_v51 }
 0x2a3   : > { %1288 = vst [vmem:[%s2938_s23 + $0xe8] sm:$0xff] %v1256_v17  ;;  %v1255_v4 = vadd.f32 %v1785_v48, %v1209_v42 }
 0x2a4   : > { %v1512_v11 = vpop.f32.mrf.mxu0 }
 0x2a5   : > { %1287 = vst [vmem:[%s2938_s23 + $0xe0] sm:$0xff] %v1255_v4  ;;  %v1144_v40 = vadd.f32 %v1512_v11, %v2931_v5 }
 0x2a6   : > { %v1138_v26 = vpop.f32.mrf.mxu0 }
 0x2a7   : > { %v1536_v2 = vpop.f32.mrf.mxu1  ;;  %v1242_v6 = vadd.f32 %v1786_v61, %v1144_v40  ;;  %v1139_v13 = vadd.f32 %v2931_v5, %v1138_v26 }
 0x2a8   : > { %v1224_v37 = vadd.f32 %v1536_v2, %v2931_v5 }
 0x2a9   : > { %v1218_v59 = vpop.f32.mrf.mxu1  ;;  %1274 = vst [vmem:[%s2938_s23 + $0x78] sm:$0xff] %v1242_v6  ;;  %v1241_v54 = vadd.f32 %v1787_v52, %v1139_v13 }
 0x2aa   : > { %v1258_v3 = vadd.f32 %v1788_v30, %v1224_v37  ;;  %v1219_v62 = vadd.f32 %v2931_v5, %v1218_v59 }
 0x2ab   : > { %1273 = vst [vmem:[%s2938_s23 + $0x70] sm:$0xff] %v1241_v54 }
 0x2ac   : > { %1290 = vst [vmem:[%s2938_s23 + $0xf8] sm:$0xff] %v1258_v3  ;;  %v1257_v45 = vadd.f32 %v1789_v29, %v1219_v62 }
 0x2ae   : > { %1289 = vst [vmem:[%s2938_s23 + $0xf0] sm:$0xff] %v1257_v45 }
 0x2af   : > { %1857 = shalt.err (!%p1854_p0)
}
 0x2b0   : > { %s1858_s7 = scalar_lea.hbm %s3034_s11, 4096  ;;  %s1862_s6 = scalar_lea.hbm %s3088_s5, 8192 }
 0x2b1   : > { %p1859_p5 = scmp.ne.s32.totalorder %s3034_s11, %s1858_s7  ;;  %p1863_p4 = scmp.lt.s32.totalorder %s3034_s11, %s3088_s5 }
 0x2b2   : > { %p1864_p6 = scmp.lt.s32.totalorder %s1862_s6, %s1858_s7 }
 0x2b3   : > { %p1860_p2 = pnand %p1859_p5, %p3122_p11 }
 0x2b4   : > { %p1865_p8 = por %p1864_p6, %p1863_p4 }
 0x2b5   : > { %p1861_p1 = pneg %p1860_p2 }
 0x2b7   : > { %p1866_p3 = pnand %p1865_p8, %p1861_p1 }
 0x2b9   : > { %1869 = shalt.err (!%p1866_p3)
}
 0x2ba   : > { %s1919_s27 = smov 128   ;;  %s1920_s28 = smov 8  }
 0x2bb   : > { %1575 = dma.vmem_to_hbm [thread:$0]  (%p3122_p11), %s3036_s15, 4096, %s3034_s11, %s1292_s22, %s1919_s27, %s1919_s27, %s1920_s28  }
 0x2bc PF: > { %s1320_s12 = sand.u32 1, %s1900_s18   ;;  %p3123_p7 = scmp.ne.s32.totalorder %s3100_s25, 0 }
 0x2bd   : > { %p3124_p9 = scmp.ge.s32.totalorder %s1912_s21, 2  ;;  %s1321_s9 = scalar_lea.sflag [#allocation4], %s1320_s12 }
 0x2bf   : > { %p1586_p10 = pnand %p3124_p9, %p3123_p7 }
 0x2c1   : > { %p1587_p12 = pneg %p1586_p10 }
 0x2c3   : > { %1895 = dma.done.wait (%p1587_p12), %s1321_s9, 4096  }
 0x2c4   : > { %1897 = vsyncadd (%p1587_p12), %s1321_s9, 4294963200  ;;  %p19_p13 = scmp.ge.s32.totalorder %s2005_s30, 4   ;;  %s3125_s18 = smov %s1904_s19 }
 0x2c5   : > { %s3126_s19 = smov %s1908_s20  ;;  %s3127_s20 = smov %s2025_s13 }
 0x2c6   : > { %s3128_s21 = smov %s2005_s30  ;;  %21 = sbr.rel (!%p19_p13) target bundleno = 6 (0x6), region = 89 }
 0x2cb   :  { %1326 = vsyncpa [#allocation3], 1 }
 0x2cc   :  { %1328 = vsyncpa [#allocation3 + $0x1], 1 }
 0x2cd   :  { %1329 = vsyncpa [#allocation6], 1 }
 0x2ce   :  { %1330 = vsyncpa [#allocation4], 1 }
 0x2cf   :  { %1332 = vsyncpa [#allocation4 + $0x1], 1 }

</bundles_post_ra>
